<compile_context>
chip_gen: v7x
topology: tpu7x:2x2x1
jax: 0.10.0
libtpu: 0.0.40
codegen_flags: <defaults>
</compile_context>

<pallas_src>
import jax
import jax.numpy as jnp
from jax.experimental import pallas as pl
from jax.experimental.pallas import tpu as pltpu

_NEG_SLOPE = 0.01  # F.leaky_relu default slope (ConvLayer, conv_type="normal")


def _make_kernel(kernel_size, depth, b_blk, n_wb):
    K = kernel_size

    def _conv_lrelu(h, w_ref, b_ref):
        # h: (Cin, T) value; w_ref: (Cout, K*Cin) bf16; b_ref: (Cout, 1) f32.
        hb = h.astype(jnp.bfloat16)
        t_out = hb.shape[1] - (K - 1)
        # Pack the K taps into one contraction: (Cout,K*Cin) @ (K*Cin,t_out).
        stack = jnp.concatenate([hb[:, k:k + t_out] for k in range(K)], axis=0)
        y = jnp.dot(w_ref[...], stack, preferred_element_type=jnp.float32)
        y = y + b_ref[...]
        return jnp.where(y > 0.0, y, _NEG_SLOPE * y)        # (Cout, t_out) f32

    def kernel(x_ref, *refs):
        wb = refs[:n_wb]                     # (w, b) pairs: pre*, post*, down
        sel_ref = refs[n_wb]                 # (T_dense, T_down) 0/1 selection
        o_short_ref = refs[n_wb + 1]
        o_down_ref = refs[n_wb + 2]

        for b in range(b_blk):               # static unroll over the batch slab
            h = x_ref[b]                     # (c_in, T_in) bf16

            # pre_shortcut_convs
            for i in range(depth):
                h = _conv_lrelu(h, wb[2 * i], wb[2 * i + 1])
            o_short_ref[b] = h.astype(o_short_ref.dtype)

            # post_shortcut_convs
            for i in range(depth, 2 * depth):
                h = _conv_lrelu(h, wb[2 * i], wb[2 * i + 1])

            # downconv: dense tap-packed conv, then stride-s column selection
            # as a second MXU matmul (keeps stores lane-dense, no lane-strided
            # loads, no VMEM staging round trip).
            wd_ref, bd_ref = wb[4 * depth], wb[4 * depth + 1]
            hb = h.astype(jnp.bfloat16)
            t_dense = hb.shape[1] - (K - 1)
            stack = jnp.concatenate([hb[:, k:k + t_dense] for k in range(K)], axis=0)
            y_dense = jnp.dot(wd_ref[...], stack, preferred_element_type=jnp.float32)
            y = jnp.dot(y_dense.astype(jnp.bfloat16), sel_ref[...],
                        preferred_element_type=jnp.float32)
            y = y + bd_ref[...]
            o_down_ref[b] = jnp.where(y > 0.0, y, _NEG_SLOPE * y).astype(o_down_ref.dtype)

    return kernel


def downsampling_block_forward(x_nct, pre_params, post_params, down_params,
                               *, kernel_size, stride):
    """x_nct: (B, n_inputs, T) float (PyTorch NCW layout).
    *_params: PyTorch Conv1d layout -- weight (Cout, Cin, K), bias (Cout,).
    Returns (out, shortcut) in NCW layout, matching the PyTorch module."""
    assert stride > 1
    B, c_in, T_in = x_nct.shape
    K, s = kernel_size, stride
    depth = len(pre_params)
    c_short = pre_params[0][0].shape[0]
    c_out = post_params[0][0].shape[0]

    T_s = T_in - depth * (K - 1)                 # shortcut length
    T_p = T_s - depth * (K - 1)                  # post-chain length
    assert T_p >= K
    T_d = (T_p - K) // s + 1                     # downsampled length
    T_dense = T_p - (K - 1)                      # dense (stride-1) downconv length

    # Channel-major activations (NCW already is channel-major); bf16 matmul inputs.
    x = x_nct.astype(jnp.bfloat16)

    flat = []
    for (w, b) in list(pre_params) + list(post_params) + [down_params]:
        co, ci, k = w.shape
        w_flat = jnp.transpose(w, (0, 2, 1)).reshape(co, k * ci)   # (Cout, K*Cin)
        flat.append(w_flat.astype(jnp.bfloat16))
        flat.append(b.reshape(-1, 1).astype(jnp.float32))          # (Cout, 1)

    # Constant 0/1 matrix selecting every s-th dense downconv column.
    sel = (jnp.arange(T_dense)[:, None] == s * jnp.arange(T_d)[None, :]
           ).astype(jnp.bfloat16)
    consts = flat + [sel]

    # --- generation-aware batch-slab sizing (v7x has 64 MiB VMEM/core) ------
    try:
        vmem_cap = int(pltpu.get_tpu_info().vmem_capacity_bytes)
    except Exception:
        vmem_cap = 128 << 20
    c_max = max(c_in, c_short, c_out)
    wgt_bytes = 2 * sum(int(a.size) * a.dtype.itemsize for a in consts)
    per_elem = (2 * 2 * c_in * T_in                         # x bf16, double-buffered
                + 2 * 4 * (c_short * T_s + c_out * T_d)     # f32 outputs, double-buffered
                + 4 * (K + 4) * c_max * T_in)               # in-flight stacks / acc / spill slack
    budget = vmem_cap // 2
    b_blk = int(max(1, min(B, 8, (budget - wgt_bytes) // per_elem)))
    while B % b_blk:
        b_blk -= 1
    n_steps = B // b_blk

    # Cost estimate (tap-packed matmuls + selection matmul; bytes of I/O + consts).
    chans = ([(c_in, c_short)] + [(c_short, c_short)] * (depth - 1)
             + [(c_short, c_out)] + [(c_out, c_out)] * (depth - 1))
    flops, t = 0, T_in
    for ci, co in chans:
        t -= (K - 1)
        flops += 2 * t * K * ci * co
    flops += 2 * T_dense * K * c_out * c_out        # dense downconv taps
    flops += 2 * c_out * T_dense * T_d              # stride-selection matmul
    flops *= B
    bytes_accessed = (2 * B * c_in * T_in
                      + 4 * B * (c_short * T_s + c_out * T_d)
                      + sum(int(a.size) * a.dtype.itemsize for a in consts))
    cost = pl.CostEstimate(flops=int(flops), transcendentals=0,
                           bytes_accessed=int(bytes_accessed))

    need = b_blk * per_elem + wgt_bytes + (8 << 20)
    vmem_limit = int(min(max(32 << 20, need), (vmem_cap * 7) // 10))

    def const_spec(a):
        nd = a.ndim
        return pl.BlockSpec(a.shape, lambda i, _nd=nd: (0,) * _nd)

    in_specs = [pl.BlockSpec((b_blk, c_in, T_in), lambda i: (i, 0, 0))]
    in_specs += [const_spec(a) for a in consts]
    out_specs = [pl.BlockSpec((b_blk, c_short, T_s), lambda i: (i, 0, 0)),
                 pl.BlockSpec((b_blk, c_out, T_d), lambda i: (i, 0, 0))]

    n_wb = 2 * (2 * depth + 1)
    shortcut, down = pl.pallas_call(
        _make_kernel(K, depth, b_blk, n_wb),
        out_shape=(jax.ShapeDtypeStruct((B, c_short, T_s), jnp.float32),
                   jax.ShapeDtypeStruct((B, c_out, T_d), jnp.float32)),
        grid_spec=pltpu.PrefetchScalarGridSpec(
            num_scalar_prefetch=0,
            grid=(n_steps,),
            in_specs=in_specs,
            out_specs=out_specs),
        compiler_params=pltpu.CompilerParams(
            dimension_semantics=("parallel",),
            vmem_limit_bytes=vmem_limit),
        cost_estimate=cost,
    )(x, *consts)

    return down, shortcut                     # (out, shortcut), both NCW


if __name__ == "__main__":
    key = jax.random.PRNGKey(0)
    B, c_in, c_short, c_out = 2, 16, 24, 32
    K, stride, depth, T_in = 5, 2, 2, 256

    keys = jax.random.split(key, 2 * depth + 2)
    kx, kp = keys[0], keys[1:]

    x = jax.random.normal(kx, (B, c_in, T_in), jnp.float32)

    def init_conv(k, ci, co, ksz):
        kw, kb = jax.random.split(k)
        bound = 1.0 / jnp.sqrt(ci * ksz)
        w = jax.random.uniform(kw, (co, ci, ksz), jnp.float32, -bound, bound)
        b = jax.random.uniform(kb, (co,), jnp.float32, -bound, bound)
        return w, b                                      # PyTorch Conv1d layout

    chans_pre = [(c_in, c_short)] + [(c_short, c_short)] * (depth - 1)
    chans_post = [(c_short, c_out)] + [(c_out, c_out)] * (depth - 1)
    pre_params = [init_conv(kp[i], ci, co, K) for i, (ci, co) in enumerate(chans_pre)]
    post_params = [init_conv(kp[depth + i], ci, co, K)
                   for i, (ci, co) in enumerate(chans_post)]
    down_params = init_conv(kp[2 * depth], c_out, c_out, K)

    out, shortcut = downsampling_block_forward(
        x, pre_params, post_params, down_params, kernel_size=K, stride=stride)
    out, shortcut = jax.block_until_ready((out, shortcut))

    # Pure-JAX f32 reference mirroring the PyTorch module (valid Conv1d +
    # LeakyReLU per ConvLayer, conv_type="normal", res="learned", Tab=False).
    def ref_conv(xr, w, b, s_):
        ksz = w.shape[-1]
        t_out = (xr.shape[-1] - ksz) // s_ + 1
        y = jnp.zeros((xr.shape[0], w.shape[0], t_out), jnp.float32)
        for k in range(ksz):
            xs = xr[:, :, k: k + (t_out - 1) * s_ + 1: s_]
            y = y + jnp.einsum('oi,bit->bot', w[:, :, k], xs)
        y = y + b[None, :, None]
        return jnp.where(y > 0.0, y, _NEG_SLOPE * y)

    h = x
    for (w, b) in pre_params:
        h = ref_conv(h, w, b, 1)
    shortcut_ref = h
    for (w, b) in post_params:
        h = ref_conv(h, w, b, 1)
    out_ref = ref_conv(h, down_params[0], down_params[1], stride)

    assert out.shape == out_ref.shape, (out.shape, out_ref.shape)
    assert shortcut.shape == shortcut_ref.shape, (shortcut.shape, shortcut_ref.shape)
    # Tolerance covers the intentional bf16-matmul-input precision contract
    # (f32 accumulation); real bugs (tap/stride misalignment) give O(0.1+)
    # errors while bf16 rounding through 5 chained layers stays ~1e-2.
    assert jnp.allclose(shortcut, shortcut_ref, atol=3e-2, rtol=3e-2)
    assert jnp.allclose(out, out_ref, atol=3e-2, rtol=3e-2)

    print("KERNEL_OK")
</pallas_src>

<mosaic_0001>
module attributes {stable_mosaic.version = 11 : i64} {
  func.func @kernel(%arg0: i32, %arg1: memref<2x16x256xbf16, #tpu.memory_space<vmem>>, %arg2: memref<24x80xbf16, #tpu.memory_space<vmem>>, %arg3: memref<24x1xf32, #tpu.memory_space<vmem>>, %arg4: memref<24x120xbf16, #tpu.memory_space<vmem>>, %arg5: memref<24x1xf32, #tpu.memory_space<vmem>>, %arg6: memref<32x120xbf16, #tpu.memory_space<vmem>>, %arg7: memref<32x1xf32, #tpu.memory_space<vmem>>, %arg8: memref<32x160xbf16, #tpu.memory_space<vmem>>, %arg9: memref<32x1xf32, #tpu.memory_space<vmem>>, %arg10: memref<32x160xbf16, #tpu.memory_space<vmem>>, %arg11: memref<32x1xf32, #tpu.memory_space<vmem>>, %arg12: memref<236x118xbf16, #tpu.memory_space<vmem>>, %arg13: memref<2x24x248xf32, #tpu.memory_space<vmem>>, %arg14: memref<2x32x118xf32, #tpu.memory_space<vmem>>) attributes {dimension_semantics = [#tpu.dimension_semantics<parallel>], iteration_bounds = array<i64: 1>, scalar_prefetch = 0 : i64, scratch_operands = 0 : i64, tpu.core_type = #tpu.core_type<tc>, window_params = [{transform_indices = @transform_0, window_bounds = array<i64: 2, 16, 256>}, {pipeline_mode = #tpu.pipeline_mode<synchronous>, transform_indices = @transform_1, window_bounds = array<i64: 24, 80>}, {pipeline_mode = #tpu.pipeline_mode<synchronous>, transform_indices = @transform_2, window_bounds = array<i64: 24, 1>}, {pipeline_mode = #tpu.pipeline_mode<synchronous>, transform_indices = @transform_3, window_bounds = array<i64: 24, 120>}, {pipeline_mode = #tpu.pipeline_mode<synchronous>, transform_indices = @transform_4, window_bounds = array<i64: 24, 1>}, {pipeline_mode = #tpu.pipeline_mode<synchronous>, transform_indices = @transform_5, window_bounds = array<i64: 32, 120>}, {pipeline_mode = #tpu.pipeline_mode<synchronous>, transform_indices = @transform_6, window_bounds = array<i64: 32, 1>}, {pipeline_mode = #tpu.pipeline_mode<synchronous>, transform_indices = @transform_7, window_bounds = array<i64: 32, 160>}, {pipeline_mode = #tpu.pipeline_mode<synchronous>, transform_indices = @transform_8, window_bounds = array<i64: 32, 1>}, {pipeline_mode = #tpu.pipeline_mode<synchronous>, transform_indices = @transform_9, window_bounds = array<i64: 32, 160>}, {pipeline_mode = #tpu.pipeline_mode<synchronous>, transform_indices = @transform_10, window_bounds = array<i64: 32, 1>}, {pipeline_mode = #tpu.pipeline_mode<synchronous>, transform_indices = @transform_11, window_bounds = array<i64: 236, 118>}, {transform_indices = @transform_12, window_bounds = array<i64: 2, 24, 248>}, {transform_indices = @transform_13, window_bounds = array<i64: 2, 32, 118>}]} {
    %c0 = arith.constant 0 : index
    %c0_0 = arith.constant 0 : index
    %c0_1 = arith.constant 0 : index
    %0 = vector.load %arg1[%c0, %c0_0, %c0_1] : memref<2x16x256xbf16, #tpu.memory_space<vmem>>, vector<1x16x256xbf16>
    %1 = vector.shape_cast %0 : vector<1x16x256xbf16> to vector<16x256xbf16>
    %2 = vector.extract_strided_slice %1 {offsets = [0, 0], sizes = [16, 252], strides = [1, 1]} : vector<16x256xbf16> to vector<16x252xbf16>
    %3 = vector.extract_strided_slice %1 {offsets = [0, 1], sizes = [16, 252], strides = [1, 1]} : vector<16x256xbf16> to vector<16x252xbf16>
    %4 = vector.extract_strided_slice %1 {offsets = [0, 2], sizes = [16, 252], strides = [1, 1]} : vector<16x256xbf16> to vector<16x252xbf16>
    %5 = vector.extract_strided_slice %1 {offsets = [0, 3], sizes = [16, 252], strides = [1, 1]} : vector<16x256xbf16> to vector<16x252xbf16>
    %6 = vector.extract_strided_slice %1 {offsets = [0, 4], sizes = [16, 252], strides = [1, 1]} : vector<16x256xbf16> to vector<16x252xbf16>
    %7 = tpu.concatenate %2, %3, %4, %5, %6 in 0 : vector<16x252xbf16>, vector<16x252xbf16>, vector<16x252xbf16>, vector<16x252xbf16>, vector<16x252xbf16> -> vector<80x252xbf16>
    %c0_2 = arith.constant 0 : index
    %c0_3 = arith.constant 0 : index
    %8 = vector.load %arg2[%c0_2, %c0_3] : memref<24x80xbf16, #tpu.memory_space<vmem>>, vector<24x80xbf16>
    %cst = arith.constant dense<0.000000e+00> : vector<24x252xf32>
    %9 = tpu.matmul %8, %7, %cst {dimension_numbers = #tpu.dot_dimension_numbers<[1], [0], [0], [1], [0, 0, 1, 1], [], []>} : vector<24x80xbf16>, vector<80x252xbf16>, vector<24x252xf32> -> vector<24x252xf32>
    %c0_4 = arith.constant 0 : index
    %c0_5 = arith.constant 0 : index
    %10 = vector.load %arg3[%c0_4, %c0_5] : memref<24x1xf32, #tpu.memory_space<vmem>>, vector<24x1xf32>
    %11 = vector.broadcast %10 : vector<24x1xf32> to vector<24x252xf32>
    %12 = arith.addf %9, %11 : vector<24x252xf32>
    %cst_6 = arith.constant 0.000000e+00 : f32
    %13 = vector.broadcast %cst_6 : f32 to vector<24x252xf32>
    %14 = arith.cmpf ogt, %12, %13 : vector<24x252xf32>
    %cst_7 = arith.constant 0.00999999977 : f32
    %15 = vector.broadcast %cst_7 : f32 to vector<24x252xf32>
    %16 = arith.mulf %15, %12 : vector<24x252xf32>
    %17 = arith.select %14, %12, %16 : vector<24x252xi1>, vector<24x252xf32>
    %18 = arith.truncf %17 : vector<24x252xf32> to vector<24x252xbf16>
    %19 = vector.extract_strided_slice %18 {offsets = [0, 0], sizes = [24, 248], strides = [1, 1]} : vector<24x252xbf16> to vector<24x248xbf16>
    %20 = vector.extract_strided_slice %18 {offsets = [0, 1], sizes = [24, 248], strides = [1, 1]} : vector<24x252xbf16> to vector<24x248xbf16>
    %21 = vector.extract_strided_slice %18 {offsets = [0, 2], sizes = [24, 248], strides = [1, 1]} : vector<24x252xbf16> to vector<24x248xbf16>
    %22 = vector.extract_strided_slice %18 {offsets = [0, 3], sizes = [24, 248], strides = [1, 1]} : vector<24x252xbf16> to vector<24x248xbf16>
    %23 = vector.extract_strided_slice %18 {offsets = [0, 4], sizes = [24, 248], strides = [1, 1]} : vector<24x252xbf16> to vector<24x248xbf16>
    %24 = tpu.concatenate %19, %20, %21, %22, %23 in 0 : vector<24x248xbf16>, vector<24x248xbf16>, vector<24x248xbf16>, vector<24x248xbf16>, vector<24x248xbf16> -> vector<120x248xbf16>
    %c0_8 = arith.constant 0 : index
    %c0_9 = arith.constant 0 : index
    %25 = vector.load %arg4[%c0_8, %c0_9] : memref<24x120xbf16, #tpu.memory_space<vmem>>, vector<24x120xbf16>
    %cst_10 = arith.constant dense<0.000000e+00> : vector<24x248xf32>
    %26 = tpu.matmul %25, %24, %cst_10 {dimension_numbers = #tpu.dot_dimension_numbers<[1], [0], [0], [1], [0, 0, 1, 1], [], []>} : vector<24x120xbf16>, vector<120x248xbf16>, vector<24x248xf32> -> vector<24x248xf32>
    %c0_11 = arith.constant 0 : index
    %c0_12 = arith.constant 0 : index
    %27 = vector.load %arg5[%c0_11, %c0_12] : memref<24x1xf32, #tpu.memory_space<vmem>>, vector<24x1xf32>
    %28 = vector.broadcast %27 : vector<24x1xf32> to vector<24x248xf32>
    %29 = arith.addf %26, %28 : vector<24x248xf32>
    %cst_13 = arith.constant 0.000000e+00 : f32
    %30 = vector.broadcast %cst_13 : f32 to vector<24x248xf32>
    %31 = arith.cmpf ogt, %29, %30 : vector<24x248xf32>
    %cst_14 = arith.constant 0.00999999977 : f32
    %32 = vector.broadcast %cst_14 : f32 to vector<24x248xf32>
    %33 = arith.mulf %32, %29 : vector<24x248xf32>
    %34 = arith.select %31, %29, %33 : vector<24x248xi1>, vector<24x248xf32>
    %c0_15 = arith.constant 0 : index
    %c0_16 = arith.constant 0 : index
    %c0_17 = arith.constant 0 : index
    %35 = vector.load %arg13[%c0_15, %c0_16, %c0_17] : memref<2x24x248xf32, #tpu.memory_space<vmem>>, vector<1x24x248xf32>
    %36 = vector.shape_cast %35 : vector<1x24x248xf32> to vector<24x248xf32>
    %37 = vector.shape_cast %34 : vector<24x248xf32> to vector<1x24x248xf32>
    tpu.vector_store %arg13[%c0_15, %c0_16, %c0_17], %37 {strides = array<i32>} : memref<2x24x248xf32, #tpu.memory_space<vmem>>, vector<1x24x248xf32>,
    %38 = arith.truncf %34 : vector<24x248xf32> to vector<24x248xbf16>
    %39 = vector.extract_strided_slice %38 {offsets = [0, 0], sizes = [24, 244], strides = [1, 1]} : vector<24x248xbf16> to vector<24x244xbf16>
    %40 = vector.extract_strided_slice %38 {offsets = [0, 1], sizes = [24, 244], strides = [1, 1]} : vector<24x248xbf16> to vector<24x244xbf16>
    %41 = vector.extract_strided_slice %38 {offsets = [0, 2], sizes = [24, 244], strides = [1, 1]} : vector<24x248xbf16> to vector<24x244xbf16>
    %42 = vector.extract_strided_slice %38 {offsets = [0, 3], sizes = [24, 244], strides = [1, 1]} : vector<24x248xbf16> to vector<24x244xbf16>
    %43 = vector.extract_strided_slice %38 {offsets = [0, 4], sizes = [24, 244], strides = [1, 1]} : vector<24x248xbf16> to vector<24x244xbf16>
    %44 = tpu.concatenate %39, %40, %41, %42, %43 in 0 : vector<24x244xbf16>, vector<24x244xbf16>, vector<24x244xbf16>, vector<24x244xbf16>, vector<24x244xbf16> -> vector<120x244xbf16>
    %c0_18 = arith.constant 0 : index
    %c0_19 = arith.constant 0 : index
    %45 = vector.load %arg6[%c0_18, %c0_19] : memref<32x120xbf16, #tpu.memory_space<vmem>>, vector<32x120xbf16>
    %cst_20 = arith.constant dense<0.000000e+00> : vector<32x244xf32>
    %46 = tpu.matmul %45, %44, %cst_20 {dimension_numbers = #tpu.dot_dimension_numbers<[1], [0], [0], [1], [0, 0, 1, 1], [], []>} : vector<32x120xbf16>, vector<120x244xbf16>, vector<32x244xf32> -> vector<32x244xf32>
    %c0_21 = arith.constant 0 : index
    %c0_22 = arith.constant 0 : index
    %47 = vector.load %arg7[%c0_21, %c0_22] : memref<32x1xf32, #tpu.memory_space<vmem>>, vector<32x1xf32>
    %48 = vector.broadcast %47 : vector<32x1xf32> to vector<32x244xf32>
    %49 = arith.addf %46, %48 : vector<32x244xf32>
    %cst_23 = arith.constant 0.000000e+00 : f32
    %50 = vector.broadcast %cst_23 : f32 to vector<32x244xf32>
    %51 = arith.cmpf ogt, %49, %50 : vector<32x244xf32>
    %cst_24 = arith.constant 0.00999999977 : f32
    %52 = vector.broadcast %cst_24 : f32 to vector<32x244xf32>
    %53 = arith.mulf %52, %49 : vector<32x244xf32>
    %54 = arith.select %51, %49, %53 : vector<32x244xi1>, vector<32x244xf32>
    %55 = arith.truncf %54 : vector<32x244xf32> to vector<32x244xbf16>
    %56 = vector.extract_strided_slice %55 {offsets = [0, 0], sizes = [32, 240], strides = [1, 1]} : vector<32x244xbf16> to vector<32x240xbf16>
    %57 = vector.extract_strided_slice %55 {offsets = [0, 1], sizes = [32, 240], strides = [1, 1]} : vector<32x244xbf16> to vector<32x240xbf16>
    %58 = vector.extract_strided_slice %55 {offsets = [0, 2], sizes = [32, 240], strides = [1, 1]} : vector<32x244xbf16> to vector<32x240xbf16>
    %59 = vector.extract_strided_slice %55 {offsets = [0, 3], sizes = [32, 240], strides = [1, 1]} : vector<32x244xbf16> to vector<32x240xbf16>
    %60 = vector.extract_strided_slice %55 {offsets = [0, 4], sizes = [32, 240], strides = [1, 1]} : vector<32x244xbf16> to vector<32x240xbf16>
    %61 = tpu.concatenate %56, %57, %58, %59, %60 in 0 : vector<32x240xbf16>, vector<32x240xbf16>, vector<32x240xbf16>, vector<32x240xbf16>, vector<32x240xbf16> -> vector<160x240xbf16>
    %c0_25 = arith.constant 0 : index
    %c0_26 = arith.constant 0 : index
    %62 = vector.load %arg8[%c0_25, %c0_26] : memref<32x160xbf16, #tpu.memory_space<vmem>>, vector<32x160xbf16>
    %cst_27 = arith.constant dense<0.000000e+00> : vector<32x240xf32>
    %63 = tpu.matmul %62, %61, %cst_27 {dimension_numbers = #tpu.dot_dimension_numbers<[1], [0], [0], [1], [0, 0, 1, 1], [], []>} : vector<32x160xbf16>, vector<160x240xbf16>, vector<32x240xf32> -> vector<32x240xf32>
    %c0_28 = arith.constant 0 : index
    %c0_29 = arith.constant 0 : index
    %64 = vector.load %arg9[%c0_28, %c0_29] : memref<32x1xf32, #tpu.memory_space<vmem>>, vector<32x1xf32>
    %65 = vector.broadcast %64 : vector<32x1xf32> to vector<32x240xf32>
    %66 = arith.addf %63, %65 : vector<32x240xf32>
    %cst_30 = arith.constant 0.000000e+00 : f32
    %67 = vector.broadcast %cst_30 : f32 to vector<32x240xf32>
    %68 = arith.cmpf ogt, %66, %67 : vector<32x240xf32>
    %cst_31 = arith.constant 0.00999999977 : f32
    %69 = vector.broadcast %cst_31 : f32 to vector<32x240xf32>
    %70 = arith.mulf %69, %66 : vector<32x240xf32>
    %71 = arith.select %68, %66, %70 : vector<32x240xi1>, vector<32x240xf32>
    %72 = arith.truncf %71 : vector<32x240xf32> to vector<32x240xbf16>
    %73 = vector.extract_strided_slice %72 {offsets = [0, 0], sizes = [32, 236], strides = [1, 1]} : vector<32x240xbf16> to vector<32x236xbf16>
    %74 = vector.extract_strided_slice %72 {offsets = [0, 1], sizes = [32, 236], strides = [1, 1]} : vector<32x240xbf16> to vector<32x236xbf16>
    %75 = vector.extract_strided_slice %72 {offsets = [0, 2], sizes = [32, 236], strides = [1, 1]} : vector<32x240xbf16> to vector<32x236xbf16>
    %76 = vector.extract_strided_slice %72 {offsets = [0, 3], sizes = [32, 236], strides = [1, 1]} : vector<32x240xbf16> to vector<32x236xbf16>
    %77 = vector.extract_strided_slice %72 {offsets = [0, 4], sizes = [32, 236], strides = [1, 1]} : vector<32x240xbf16> to vector<32x236xbf16>
    %78 = tpu.concatenate %73, %74, %75, %76, %77 in 0 : vector<32x236xbf16>, vector<32x236xbf16>, vector<32x236xbf16>, vector<32x236xbf16>, vector<32x236xbf16> -> vector<160x236xbf16>
    %c0_32 = arith.constant 0 : index
    %c0_33 = arith.constant 0 : index
    %79 = vector.load %arg10[%c0_32, %c0_33] : memref<32x160xbf16, #tpu.memory_space<vmem>>, vector<32x160xbf16>
    %cst_34 = arith.constant dense<0.000000e+00> : vector<32x236xf32>
    %80 = tpu.matmul %79, %78, %cst_34 {dimension_numbers = #tpu.dot_dimension_numbers<[1], [0], [0], [1], [0, 0, 1, 1], [], []>} : vector<32x160xbf16>, vector<160x236xbf16>, vector<32x236xf32> -> vector<32x236xf32>
    %81 = arith.truncf %80 : vector<32x236xf32> to vector<32x236xbf16>
    %c0_35 = arith.constant 0 : index
    %c0_36 = arith.constant 0 : index
    %82 = vector.load %arg12[%c0_35, %c0_36] : memref<236x118xbf16, #tpu.memory_space<vmem>>, vector<236x118xbf16>
    %cst_37 = arith.constant dense<0.000000e+00> : vector<32x118xf32>
    %83 = tpu.matmul %81, %82, %cst_37 {dimension_numbers = #tpu.dot_dimension_numbers<[1], [0], [0], [1], [0, 0, 1, 1], [], []>} : vector<32x236xbf16>, vector<236x118xbf16>, vector<32x118xf32> -> vector<32x118xf32>
    %c0_38 = arith.constant 0 : index
    %c0_39 = arith.constant 0 : index
    %84 = vector.load %arg11[%c0_38, %c0_39] : memref<32x1xf32, #tpu.memory_space<vmem>>, vector<32x1xf32>
    %85 = vector.broadcast %84 : vector<32x1xf32> to vector<32x118xf32>
    %86 = arith.addf %83, %85 : vector<32x118xf32>
    %cst_40 = arith.constant 0.000000e+00 : f32
    %87 = vector.broadcast %cst_40 : f32 to vector<32x118xf32>
    %88 = arith.cmpf ogt, %86, %87 : vector<32x118xf32>
    %cst_41 = arith.constant 0.00999999977 : f32
    %89 = vector.broadcast %cst_41 : f32 to vector<32x118xf32>
    %90 = arith.mulf %89, %86 : vector<32x118xf32>
    %91 = arith.select %88, %86, %90 : vector<32x118xi1>, vector<32x118xf32>
    %c0_42 = arith.constant 0 : index
    %c0_43 = arith.constant 0 : index
    %c0_44 = arith.constant 0 : index
    %92 = vector.load %arg14[%c0_42, %c0_43, %c0_44] : memref<2x32x118xf32, #tpu.memory_space<vmem>>, vector<1x32x118xf32>
    %93 = vector.shape_cast %92 : vector<1x32x118xf32> to vector<32x118xf32>
    %94 = vector.shape_cast %91 : vector<32x118xf32> to vector<1x32x118xf32>
    tpu.vector_store %arg14[%c0_42, %c0_43, %c0_44], %94 {strides = array<i32>} : memref<2x32x118xf32, #tpu.memory_space<vmem>>, vector<1x32x118xf32>,
    %c1 = arith.constant 1 : index
    %c0_45 = arith.constant 0 : index
    %c0_46 = arith.constant 0 : index
    %95 = vector.load %arg1[%c1, %c0_45, %c0_46] : memref<2x16x256xbf16, #tpu.memory_space<vmem>>, vector<1x16x256xbf16>
    %96 = vector.shape_cast %95 : vector<1x16x256xbf16> to vector<16x256xbf16>
    %97 = vector.extract_strided_slice %96 {offsets = [0, 0], sizes = [16, 252], strides = [1, 1]} : vector<16x256xbf16> to vector<16x252xbf16>
    %98 = vector.extract_strided_slice %96 {offsets = [0, 1], sizes = [16, 252], strides = [1, 1]} : vector<16x256xbf16> to vector<16x252xbf16>
    %99 = vector.extract_strided_slice %96 {offsets = [0, 2], sizes = [16, 252], strides = [1, 1]} : vector<16x256xbf16> to vector<16x252xbf16>
    %100 = vector.extract_strided_slice %96 {offsets = [0, 3], sizes = [16, 252], strides = [1, 1]} : vector<16x256xbf16> to vector<16x252xbf16>
    %101 = vector.extract_strided_slice %96 {offsets = [0, 4], sizes = [16, 252], strides = [1, 1]} : vector<16x256xbf16> to vector<16x252xbf16>
    %102 = tpu.concatenate %97, %98, %99, %100, %101 in 0 : vector<16x252xbf16>, vector<16x252xbf16>, vector<16x252xbf16>, vector<16x252xbf16>, vector<16x252xbf16> -> vector<80x252xbf16>
    %c0_47 = arith.constant 0 : index
    %c0_48 = arith.constant 0 : index
    %103 = vector.load %arg2[%c0_47, %c0_48] : memref<24x80xbf16, #tpu.memory_space<vmem>>, vector<24x80xbf16>
    %cst_49 = arith.constant dense<0.000000e+00> : vector<24x252xf32>
    %104 = tpu.matmul %103, %102, %cst_49 {dimension_numbers = #tpu.dot_dimension_numbers<[1], [0], [0], [1], [0, 0, 1, 1], [], []>} : vector<24x80xbf16>, vector<80x252xbf16>, vector<24x252xf32> -> vector<24x252xf32>
    %c0_50 = arith.constant 0 : index
    %c0_51 = arith.constant 0 : index
    %105 = vector.load %arg3[%c0_50, %c0_51] : memref<24x1xf32, #tpu.memory_space<vmem>>, vector<24x1xf32>
    %106 = vector.broadcast %105 : vector<24x1xf32> to vector<24x252xf32>
    %107 = arith.addf %104, %106 : vector<24x252xf32>
    %cst_52 = arith.constant 0.000000e+00 : f32
    %108 = vector.broadcast %cst_52 : f32 to vector<24x252xf32>
    %109 = arith.cmpf ogt, %107, %108 : vector<24x252xf32>
    %cst_53 = arith.constant 0.00999999977 : f32
    %110 = vector.broadcast %cst_53 : f32 to vector<24x252xf32>
    %111 = arith.mulf %110, %107 : vector<24x252xf32>
    %112 = arith.select %109, %107, %111 : vector<24x252xi1>, vector<24x252xf32>
    %113 = arith.truncf %112 : vector<24x252xf32> to vector<24x252xbf16>
    %114 = vector.extract_strided_slice %113 {offsets = [0, 0], sizes = [24, 248], strides = [1, 1]} : vector<24x252xbf16> to vector<24x248xbf16>
    %115 = vector.extract_strided_slice %113 {offsets = [0, 1], sizes = [24, 248], strides = [1, 1]} : vector<24x252xbf16> to vector<24x248xbf16>
    %116 = vector.extract_strided_slice %113 {offsets = [0, 2], sizes = [24, 248], strides = [1, 1]} : vector<24x252xbf16> to vector<24x248xbf16>
    %117 = vector.extract_strided_slice %113 {offsets = [0, 3], sizes = [24, 248], strides = [1, 1]} : vector<24x252xbf16> to vector<24x248xbf16>
    %118 = vector.extract_strided_slice %113 {offsets = [0, 4], sizes = [24, 248], strides = [1, 1]} : vector<24x252xbf16> to vector<24x248xbf16>
    %119 = tpu.concatenate %114, %115, %116, %117, %118 in 0 : vector<24x248xbf16>, vector<24x248xbf16>, vector<24x248xbf16>, vector<24x248xbf16>, vector<24x248xbf16> -> vector<120x248xbf16>
    %c0_54 = arith.constant 0 : index
    %c0_55 = arith.constant 0 : index
    %120 = vector.load %arg4[%c0_54, %c0_55] : memref<24x120xbf16, #tpu.memory_space<vmem>>, vector<24x120xbf16>
    %cst_56 = arith.constant dense<0.000000e+00> : vector<24x248xf32>
    %121 = tpu.matmul %120, %119, %cst_56 {dimension_numbers = #tpu.dot_dimension_numbers<[1], [0], [0], [1], [0, 0, 1, 1], [], []>} : vector<24x120xbf16>, vector<120x248xbf16>, vector<24x248xf32> -> vector<24x248xf32>
    %c0_57 = arith.constant 0 : index
    %c0_58 = arith.constant 0 : index
    %122 = vector.load %arg5[%c0_57, %c0_58] : memref<24x1xf32, #tpu.memory_space<vmem>>, vector<24x1xf32>
    %123 = vector.broadcast %122 : vector<24x1xf32> to vector<24x248xf32>
    %124 = arith.addf %121, %123 : vector<24x248xf32>
    %cst_59 = arith.constant 0.000000e+00 : f32
    %125 = vector.broadcast %cst_59 : f32 to vector<24x248xf32>
    %126 = arith.cmpf ogt, %124, %125 : vector<24x248xf32>
    %cst_60 = arith.constant 0.00999999977 : f32
    %127 = vector.broadcast %cst_60 : f32 to vector<24x248xf32>
    %128 = arith.mulf %127, %124 : vector<24x248xf32>
    %129 = arith.select %126, %124, %128 : vector<24x248xi1>, vector<24x248xf32>
    %c1_61 = arith.constant 1 : index
    %c0_62 = arith.constant 0 : index
    %c0_63 = arith.constant 0 : index
    %130 = vector.load %arg13[%c1_61, %c0_62, %c0_63] : memref<2x24x248xf32, #tpu.memory_space<vmem>>, vector<1x24x248xf32>
    %131 = vector.shape_cast %130 : vector<1x24x248xf32> to vector<24x248xf32>
    %132 = vector.shape_cast %129 : vector<24x248xf32> to vector<1x24x248xf32>
    tpu.vector_store %arg13[%c1_61, %c0_62, %c0_63], %132 {strides = array<i32>} : memref<2x24x248xf32, #tpu.memory_space<vmem>>, vector<1x24x248xf32>,
    %133 = arith.truncf %129 : vector<24x248xf32> to vector<24x248xbf16>
    %134 = vector.extract_strided_slice %133 {offsets = [0, 0], sizes = [24, 244], strides = [1, 1]} : vector<24x248xbf16> to vector<24x244xbf16>
    %135 = vector.extract_strided_slice %133 {offsets = [0, 1], sizes = [24, 244], strides = [1, 1]} : vector<24x248xbf16> to vector<24x244xbf16>
    %136 = vector.extract_strided_slice %133 {offsets = [0, 2], sizes = [24, 244], strides = [1, 1]} : vector<24x248xbf16> to vector<24x244xbf16>
    %137 = vector.extract_strided_slice %133 {offsets = [0, 3], sizes = [24, 244], strides = [1, 1]} : vector<24x248xbf16> to vector<24x244xbf16>
    %138 = vector.extract_strided_slice %133 {offsets = [0, 4], sizes = [24, 244], strides = [1, 1]} : vector<24x248xbf16> to vector<24x244xbf16>
    %139 = tpu.concatenate %134, %135, %136, %137, %138 in 0 : vector<24x244xbf16>, vector<24x244xbf16>, vector<24x244xbf16>, vector<24x244xbf16>, vector<24x244xbf16> -> vector<120x244xbf16>
    %c0_64 = arith.constant 0 : index
    %c0_65 = arith.constant 0 : index
    %140 = vector.load %arg6[%c0_64, %c0_65] : memref<32x120xbf16, #tpu.memory_space<vmem>>, vector<32x120xbf16>
    %cst_66 = arith.constant dense<0.000000e+00> : vector<32x244xf32>
    %141 = tpu.matmul %140, %139, %cst_66 {dimension_numbers = #tpu.dot_dimension_numbers<[1], [0], [0], [1], [0, 0, 1, 1], [], []>} : vector<32x120xbf16>, vector<120x244xbf16>, vector<32x244xf32> -> vector<32x244xf32>
    %c0_67 = arith.constant 0 : index
    %c0_68 = arith.constant 0 : index
    %142 = vector.load %arg7[%c0_67, %c0_68] : memref<32x1xf32, #tpu.memory_space<vmem>>, vector<32x1xf32>
    %143 = vector.broadcast %142 : vector<32x1xf32> to vector<32x244xf32>
    %144 = arith.addf %141, %143 : vector<32x244xf32>
    %cst_69 = arith.constant 0.000000e+00 : f32
    %145 = vector.broadcast %cst_69 : f32 to vector<32x244xf32>
    %146 = arith.cmpf ogt, %144, %145 : vector<32x244xf32>
    %cst_70 = arith.constant 0.00999999977 : f32
    %147 = vector.broadcast %cst_70 : f32 to vector<32x244xf32>
    %148 = arith.mulf %147, %144 : vector<32x244xf32>
    %149 = arith.select %146, %144, %148 : vector<32x244xi1>, vector<32x244xf32>
    %150 = arith.truncf %149 : vector<32x244xf32> to vector<32x244xbf16>
    %151 = vector.extract_strided_slice %150 {offsets = [0, 0], sizes = [32, 240], strides = [1, 1]} : vector<32x244xbf16> to vector<32x240xbf16>
    %152 = vector.extract_strided_slice %150 {offsets = [0, 1], sizes = [32, 240], strides = [1, 1]} : vector<32x244xbf16> to vector<32x240xbf16>
    %153 = vector.extract_strided_slice %150 {offsets = [0, 2], sizes = [32, 240], strides = [1, 1]} : vector<32x244xbf16> to vector<32x240xbf16>
    %154 = vector.extract_strided_slice %150 {offsets = [0, 3], sizes = [32, 240], strides = [1, 1]} : vector<32x244xbf16> to vector<32x240xbf16>
    %155 = vector.extract_strided_slice %150 {offsets = [0, 4], sizes = [32, 240], strides = [1, 1]} : vector<32x244xbf16> to vector<32x240xbf16>
    %156 = tpu.concatenate %151, %152, %153, %154, %155 in 0 : vector<32x240xbf16>, vector<32x240xbf16>, vector<32x240xbf16>, vector<32x240xbf16>, vector<32x240xbf16> -> vector<160x240xbf16>
    %c0_71 = arith.constant 0 : index
    %c0_72 = arith.constant 0 : index
    %157 = vector.load %arg8[%c0_71, %c0_72] : memref<32x160xbf16, #tpu.memory_space<vmem>>, vector<32x160xbf16>
    %cst_73 = arith.constant dense<0.000000e+00> : vector<32x240xf32>
    %158 = tpu.matmul %157, %156, %cst_73 {dimension_numbers = #tpu.dot_dimension_numbers<[1], [0], [0], [1], [0, 0, 1, 1], [], []>} : vector<32x160xbf16>, vector<160x240xbf16>, vector<32x240xf32> -> vector<32x240xf32>
    %c0_74 = arith.constant 0 : index
    %c0_75 = arith.constant 0 : index
    %159 = vector.load %arg9[%c0_74, %c0_75] : memref<32x1xf32, #tpu.memory_space<vmem>>, vector<32x1xf32>
    %160 = vector.broadcast %159 : vector<32x1xf32> to vector<32x240xf32>
    %161 = arith.addf %158, %160 : vector<32x240xf32>
    %cst_76 = arith.constant 0.000000e+00 : f32
    %162 = vector.broadcast %cst_76 : f32 to vector<32x240xf32>
    %163 = arith.cmpf ogt, %161, %162 : vector<32x240xf32>
    %cst_77 = arith.constant 0.00999999977 : f32
    %164 = vector.broadcast %cst_77 : f32 to vector<32x240xf32>
    %165 = arith.mulf %164, %161 : vector<32x240xf32>
    %166 = arith.select %163, %161, %165 : vector<32x240xi1>, vector<32x240xf32>
    %167 = arith.truncf %166 : vector<32x240xf32> to vector<32x240xbf16>
    %168 = vector.extract_strided_slice %167 {offsets = [0, 0], sizes = [32, 236], strides = [1, 1]} : vector<32x240xbf16> to vector<32x236xbf16>
    %169 = vector.extract_strided_slice %167 {offsets = [0, 1], sizes = [32, 236], strides = [1, 1]} : vector<32x240xbf16> to vector<32x236xbf16>
    %170 = vector.extract_strided_slice %167 {offsets = [0, 2], sizes = [32, 236], strides = [1, 1]} : vector<32x240xbf16> to vector<32x236xbf16>
    %171 = vector.extract_strided_slice %167 {offsets = [0, 3], sizes = [32, 236], strides = [1, 1]} : vector<32x240xbf16> to vector<32x236xbf16>
    %172 = vector.extract_strided_slice %167 {offsets = [0, 4], sizes = [32, 236], strides = [1, 1]} : vector<32x240xbf16> to vector<32x236xbf16>
    %173 = tpu.concatenate %168, %169, %170, %171, %172 in 0 : vector<32x236xbf16>, vector<32x236xbf16>, vector<32x236xbf16>, vector<32x236xbf16>, vector<32x236xbf16> -> vector<160x236xbf16>
    %c0_78 = arith.constant 0 : index
    %c0_79 = arith.constant 0 : index
    %174 = vector.load %arg10[%c0_78, %c0_79] : memref<32x160xbf16, #tpu.memory_space<vmem>>, vector<32x160xbf16>
    %cst_80 = arith.constant dense<0.000000e+00> : vector<32x236xf32>
    %175 = tpu.matmul %174, %173, %cst_80 {dimension_numbers = #tpu.dot_dimension_numbers<[1], [0], [0], [1], [0, 0, 1, 1], [], []>} : vector<32x160xbf16>, vector<160x236xbf16>, vector<32x236xf32> -> vector<32x236xf32>
    %176 = arith.truncf %175 : vector<32x236xf32> to vector<32x236xbf16>
    %c0_81 = arith.constant 0 : index
    %c0_82 = arith.constant 0 : index
    %177 = vector.load %arg12[%c0_81, %c0_82] : memref<236x118xbf16, #tpu.memory_space<vmem>>, vector<236x118xbf16>
    %cst_83 = arith.constant dense<0.000000e+00> : vector<32x118xf32>
    %178 = tpu.matmul %176, %177, %cst_83 {dimension_numbers = #tpu.dot_dimension_numbers<[1], [0], [0], [1], [0, 0, 1, 1], [], []>} : vector<32x236xbf16>, vector<236x118xbf16>, vector<32x118xf32> -> vector<32x118xf32>
    %c0_84 = arith.constant 0 : index
    %c0_85 = arith.constant 0 : index
    %179 = vector.load %arg11[%c0_84, %c0_85] : memref<32x1xf32, #tpu.memory_space<vmem>>, vector<32x1xf32>
    %180 = vector.broadcast %179 : vector<32x1xf32> to vector<32x118xf32>
    %181 = arith.addf %178, %180 : vector<32x118xf32>
    %cst_86 = arith.constant 0.000000e+00 : f32
    %182 = vector.broadcast %cst_86 : f32 to vector<32x118xf32>
    %183 = arith.cmpf ogt, %181, %182 : vector<32x118xf32>
    %cst_87 = arith.constant 0.00999999977 : f32
    %184 = vector.broadcast %cst_87 : f32 to vector<32x118xf32>
    %185 = arith.mulf %184, %181 : vector<32x118xf32>
    %186 = arith.select %183, %181, %185 : vector<32x118xi1>, vector<32x118xf32>
    %c1_88 = arith.constant 1 : index
    %c0_89 = arith.constant 0 : index
    %c0_90 = arith.constant 0 : index
    %187 = vector.load %arg14[%c1_88, %c0_89, %c0_90] : memref<2x32x118xf32, #tpu.memory_space<vmem>>, vector<1x32x118xf32>
    %188 = vector.shape_cast %187 : vector<1x32x118xf32> to vector<32x118xf32>
    %189 = vector.shape_cast %186 : vector<32x118xf32> to vector<1x32x118xf32>
    tpu.vector_store %arg14[%c1_88, %c0_89, %c0_90], %189 {strides = array<i32>} : memref<2x32x118xf32, #tpu.memory_space<vmem>>, vector<1x32x118xf32>,
    return
  }
  func.func @transform_0(%arg0: i32) -> (i32, i32, i32) {
    %c0_i32 = arith.constant 0 : i32
    %c0_i32_0 = arith.constant 0 : i32
    %c0_i32_1 = arith.constant 0 : i32
    return %arg0, %c0_i32, %c0_i32_0 : i32, i32, i32
  }
  func.func @transform_1(%arg0: i32) -> (i32, i32) {
    %c0_i32 = arith.constant 0 : i32
    %c0_i32_0 = arith.constant 0 : i32
    %c0_i32_1 = arith.constant 0 : i32
    return %c0_i32, %c0_i32_0 : i32, i32
  }
  func.func @transform_2(%arg0: i32) -> (i32, i32) {
    %c0_i32 = arith.constant 0 : i32
    %c0_i32_0 = arith.constant 0 : i32
    %c0_i32_1 = arith.constant 0 : i32
    return %c0_i32, %c0_i32_0 : i32, i32
  }
  func.func @transform_3(%arg0: i32) -> (i32, i32) {
    %c0_i32 = arith.constant 0 : i32
    %c0_i32_0 = arith.constant 0 : i32
    %c0_i32_1 = arith.constant 0 : i32
    return %c0_i32, %c0_i32_0 : i32, i32
  }
  func.func @transform_4(%arg0: i32) -> (i32, i32) {
    %c0_i32 = arith.constant 0 : i32
    %c0_i32_0 = arith.constant 0 : i32
    %c0_i32_1 = arith.constant 0 : i32
    return %c0_i32, %c0_i32_0 : i32, i32
  }
  func.func @transform_5(%arg0: i32) -> (i32, i32) {
    %c0_i32 = arith.constant 0 : i32
    %c0_i32_0 = arith.constant 0 : i32
    %c0_i32_1 = arith.constant 0 : i32
    return %c0_i32, %c0_i32_0 : i32, i32
  }
  func.func @transform_6(%arg0: i32) -> (i32, i32) {
    %c0_i32 = arith.constant 0 : i32
    %c0_i32_0 = arith.constant 0 : i32
    %c0_i32_1 = arith.constant 0 : i32
    return %c0_i32, %c0_i32_0 : i32, i32
  }
  func.func @transform_7(%arg0: i32) -> (i32, i32) {
    %c0_i32 = arith.constant 0 : i32
    %c0_i32_0 = arith.constant 0 : i32
    %c0_i32_1 = arith.constant 0 : i32
    return %c0_i32, %c0_i32_0 : i32, i32
  }
  func.func @transform_8(%arg0: i32) -> (i32, i32) {
    %c0_i32 = arith.constant 0 : i32
    %c0_i32_0 = arith.constant 0 : i32
    %c0_i32_1 = arith.constant 0 : i32
    return %c0_i32, %c0_i32_0 : i32, i32
  }
  func.func @transform_9(%arg0: i32) -> (i32, i32) {
    %c0_i32 = arith.constant 0 : i32
    %c0_i32_0 = arith.constant 0 : i32
    %c0_i32_1 = arith.constant 0 : i32
    return %c0_i32, %c0_i32_0 : i32, i32
  }
  func.func @transform_10(%arg0: i32) -> (i32, i32) {
    %c0_i32 = arith.constant 0 : i32
    %c0_i32_0 = arith.constant 0 : i32
    %c0_i32_1 = arith.constant 0 : i32
    return %c0_i32, %c0_i32_0 : i32, i32
  }
  func.func @transform_11(%arg0: i32) -> (i32, i32) {
    %c0_i32 = arith.constant 0 : i32
    %c0_i32_0 = arith.constant 0 : i32
    %c0_i32_1 = arith.constant 0 : i32
    return %c0_i32, %c0_i32_0 : i32, i32
  }
  func.func @transform_12(%arg0: i32) -> (i32, i32, i32) {
    %c0_i32 = arith.constant 0 : i32
    %c0_i32_0 = arith.constant 0 : i32
    %c0_i32_1 = arith.constant 0 : i32
    return %arg0, %c0_i32, %c0_i32_0 : i32, i32, i32
  }
  func.func @transform_13(%arg0: i32) -> (i32, i32, i32) {
    %c0_i32 = arith.constant 0 : i32
    %c0_i32_0 = arith.constant 0 : i32
    %c0_i32_1 = arith.constant 0 : i32
    return %arg0, %c0_i32, %c0_i32_0 : i32, i32, i32
  }
}

</mosaic_0001>

<bundles_post_ra>
// kernel: tpu_custom_call.1
= control target key start
LH: loop header
LB: loop body
LE: loop exit
PB: predicated region body
PF: predicated region fallthrough
CT: control target
= control target key end

     0   :  { %19 = vsyncpa [#allocation3], 0  ;;  %s3451_s0 = inlined_call_operand.vmem [shape: bf16[2,16,256], index: 0, kind: input, shape index: {}]   ;;  %s3452_s1 = inlined_call_operand.hbm [shape: bf16[24,80], index: 1, kind: input, shape index: {}]   ;;  %s3453_s2 = inlined_call_operand.vmem [shape: f32[24,1], index: 2, kind: input, shape index: {}]   ;;  %s3454_s3 = inlined_call_operand.hbm [shape: bf16[24,120], index: 3, kind: input, shape index: {}]   ;;  %s3455_s4 = inlined_call_operand.vmem [shape: f32[24,1], index: 4, kind: input, shape index: {}]   ;;  %s3456_s5 = inlined_call_operand.hbm [shape: bf16[32,120], index: 5, kind: input, shape index: {}]   ;;  %s3457_s6 = inlined_call_operand.vmem [shape: f32[32,1], index: 6, kind: input, shape index: {}]   ;;  %s3458_s7 = inlined_call_operand.vmem [shape: bf16[32,160], index: 7, kind: input, shape index: {}]   ;;  %s3459_s8 = inlined_call_operand.vmem [shape: f32[32,1], index: 8, kind: input, shape index: {}]   ;;  %s3460_s9 = inlined_call_operand.hbm [shape: bf16[32,160], index: 9, kind: input, shape index: {}]   ;;  %s3461_s10 = inlined_call_operand.vmem [shape: f32[32,1], index: 10, kind: input, shape index: {}]   ;;  %s3462_s11 = inlined_call_operand.vmem [shape: bf16[236,118], index: 11, kind: input, shape index: {}]   ;;  %s3463_s12 = inlined_call_operand.hbm [shape: f32[2,24,248], index: 12, kind: output, shape index: {0}]   ;;  %s3464_s13 = inlined_call_operand.hbm [shape: f32[2,32,118], index: 13, kind: output, shape index: {1}]  }
   0x1   :  { %20 = vsyncpa [#allocation6], 0 }
   0x2   :  { %21 = vsyncpa [#allocation9], 0 }
   0x3   :  { %22 = vsyncpa [#allocation4], 0 }
   0x4   :  { %23 = vsyncpa [#allocation12], 0  ;;  %s2683_s25 = smov [#allocation5]   ;;  %s2684_s27 = smov [#allocation2]  }
   0x5   :  { %s45_s26 = sshll.u32 %s2683_s25, 4  ;;  %s31_s28 = sshll.u32 %s2684_s27, 4  ;;  %s46_s26 = int_to_ptr.vmem [resolvable:$true] %s45_s26  ;;  %s2770_s28 = int_to_ptr.vmem [resolvable:$true] %s31_s28 }
   0x6   :  { %s2541_s14 = scalar_lea.hbm %s3454_s3, 192 }
   0x7   :  { %p2542_p0 = scmp.ne.s32.totalorder %s3454_s3, %s2541_s14  ;;  %p2545_p1 = scmp.lt.u32.totalorder %s2541_s14, %s3454_s3 }
   0x9   :  { %p2547_p2 = pnand %p2545_p1, %p2542_p0 }
   0xb   :  { %2550 = shalt.err (!%p2547_p2)
}
   0xc   :  { %s2551_s19 = scalar_lea.vmem %s46_s26, 192  ;;  %p2556_p4 = scmp.lt.s32.totalorder %s46_s26, %s46_s26 }
   0xd   :  { %p2552_p3 = scmp.ne.s32.totalorder %s46_s26, %s2551_s19  ;;  %p2557_p5 = scmp.lt.s32.totalorder %s2551_s19, %s2551_s19 }
   0xf   :  { %p2558_p6 = por %p2557_p5, %p2556_p4 }
  0x11   :  { %p2559_p7 = pnand %p2558_p6, %p2552_p3 }
  0x13   :  { %2562 = shalt.err (!%p2559_p7)
}
  0x14   :  { %s2685_s20 = smov 64   ;;  %s2686_s21 = smov 4  }
  0x15   :  { %51 = dma.hbm_to_vmem [thread:$0]  %s3454_s3, 192, %s46_s26, [#allocation6], %s2685_s20, %s2685_s20, %s2686_s21  }
  0x16   :  { %s2563_s27 = scalar_lea.hbm %s3452_s1, 192 }
  0x17   :  { %p2564_p8 = scmp.ne.s32.totalorder %s3452_s1, %s2563_s27  ;;  %p2567_p9 = scmp.lt.u32.totalorder %s2563_s27, %s3452_s1 }
  0x19   :  { %p2569_p10 = pnand %p2567_p9, %p2564_p8 }
  0x1b   :  { %2572 = shalt.err (!%p2569_p10)
}
  0x1c   :  { %s2573_s16 = scalar_lea.vmem %s2770_s28, 192  ;;  %p2578_p12 = scmp.lt.s32.totalorder %s2770_s28, %s2770_s28 }
  0x1d   :  { %p2574_p11 = scmp.ne.s32.totalorder %s2770_s28, %s2573_s16  ;;  %p2579_p13 = scmp.lt.s32.totalorder %s2573_s16, %s2573_s16 }
  0x1f   :  { %p2580_p0 = por %p2579_p13, %p2578_p12 }
  0x21   :  { %p2581_p1 = pnand %p2580_p0, %p2574_p11 }
  0x23   :  { %2584 = shalt.err (!%p2581_p1)
}
  0x24   :  { %37 = dma.hbm_to_vmem [thread:$0]  %s3452_s1, 192, %s2770_s28, [#allocation3], %s2685_s20, %s2685_s20, %s2686_s21  }
  0x25   :  { %s2687_s17 = smov [#allocation7]   ;;  %s2688_s19 = smov [#allocation8]  }
  0x26   :  { %s59_s18 = sshll.u32 %s2687_s17, 4  ;;  %s77_s22 = sshll.u32 %s2688_s19, 4  ;;  %s60_s18 = int_to_ptr.vmem [resolvable:$true] %s59_s18  ;;  %s2807_s22 = int_to_ptr.vmem [resolvable:$true] %s77_s22 }
  0x27   :  { %s2585_s25 = scalar_lea.hbm %s3456_s5, 256 }
  0x28   :  { %p2586_p2 = scmp.ne.s32.totalorder %s3456_s5, %s2585_s25  ;;  %p2589_p3 = scmp.lt.u32.totalorder %s2585_s25, %s3456_s5 }
  0x2a   :  { %p2591_p4 = pnand %p2589_p3, %p2586_p2 }
  0x2c   :  { %2594 = shalt.err (!%p2591_p4)
}
  0x2d   :  { %s2595_s1 = scalar_lea.vmem %s60_s18, 256  ;;  %p2600_p6 = scmp.lt.s32.totalorder %s60_s18, %s60_s18 }
  0x2e   :  { %p2596_p5 = scmp.ne.s32.totalorder %s60_s18, %s2595_s1  ;;  %p2601_p7 = scmp.lt.s32.totalorder %s2595_s1, %s2595_s1 }
  0x30   :  { %p2602_p8 = por %p2601_p7, %p2600_p6 }
  0x32   :  { %p2603_p9 = pnand %p2602_p8, %p2596_p5 }
  0x34   :  { %2606 = shalt.err (!%p2603_p9)
}
  0x35   :  { %65 = dma.hbm_to_vmem [thread:$0]  %s3456_s5, 256, %s60_s18, [#allocation6], %s2685_s20, %s2685_s20, %s2686_s21  }
  0x36   :  { %s2607_s26 = scalar_lea.hbm %s3460_s9, 512 }
  0x37   :  { %p2608_p10 = scmp.ne.s32.totalorder %s3460_s9, %s2607_s26  ;;  %p2611_p11 = scmp.lt.u32.totalorder %s2607_s26, %s3460_s9 }
  0x39   :  { %p2613_p12 = pnand %p2611_p11, %p2608_p10 }
  0x3b   :  { %2616 = shalt.err (!%p2613_p12)
}
  0x3c   :  { %s2617_s25 = scalar_lea.vmem %s2807_s22, 512  ;;  %p2622_p0 = scmp.lt.s32.totalorder %s2807_s22, %s2807_s22 }
  0x3d   :  { %p2618_p13 = scmp.ne.s32.totalorder %s2807_s22, %s2617_s25  ;;  %p2623_p1 = scmp.lt.s32.totalorder %s2617_s25, %s2617_s25 }
  0x3f   :  { %p2624_p2 = por %p2623_p1, %p2622_p0 }
  0x41   :  { %p2625_p3 = pnand %p2624_p2, %p2618_p13 }
  0x43   :  { %2628 = shalt.err (!%p2625_p3)
}
  0x44   :  { %s2689_s5 = smov 128   ;;  %s2690_s20 = smov 8  }
  0x45   :  { %83 = dma.hbm_to_vmem [thread:$0]  %s3460_s9, 512, %s2807_s22, [#allocation9], %s2689_s5, %s2689_s5, %s2690_s20  }
  0x46   :  { %2673 = dma.done.wait [#allocation3], 192  }
  0x47   :  { %2674 = vsyncadd [#allocation3], 4294967104 }
  0x48   :  { %2675 = dma.done.wait [#allocation6], 448  }
  0x49   :  { %2676 = vsyncadd [#allocation6], 4294966848 }
  0x4a   :  { %2677 = dma.done.wait [#allocation9], 512  }
  0x4b   :  { %2678 = vsyncadd [#allocation9], 4294966784  ;;  %v2466_v0 = vld [vmem:[%s3451_s0] ss:$8 sps:$4 sm:$0xff]   ;;  %v2468_v1 = vld [vmem:[%s3451_s0 + $0x4] ss:$8 sps:$4 sm:$0xff]  }
  0x4c   :  { %s2691_s1 = smov 126   ;;  %s2692_s28 = smov 127   ;;  %181 = vmatprep.subr.bf16.mxu1 %v2468_v1  ;;  %v2693_v2 = vmov 0   ;;  %v149_v3 = vld [vmem:[%s3453_s2 + $0x8] sm:$0xff]  ;;  %v148_v4 = vld [vmem:[%s3453_s2] sm:$0xff]  ;;  %v150_v5 = vld [vmem:[%s3453_s2 + $0x10] sm:$0xff] }
  0x4d   :  { %121 = vrot.lane.b32.xlu1 %v2466_v0, %s2691_s1  ;;  %113 = vrot.lane.b32.xlu0 %v2466_v0, %s2692_s28  ;;  %s2694_s9 = smov 125   ;;  %s2695_s22 = smov 124   ;;  %vm117_vm0 = vcmask 1039360   ;;  %vm125_vm1 = vcmask 1031168   ;;  %vm133_vm2 = vcmask 1022976   ;;  %vm141_vm3 = vcmask 1014784  }
  0x4e   :  { %182 = vmatpush1.bf16.msra.mxu1 %v2466_v0  ;;  %213 = vmatprep.mubr.bf16.mxu1 %v2693_v2  ;;  %v2469_v18 = vld [vmem:[#allocation2] sm:$0xff]   ;;  %vm174_vm4 = vcmask 654336   ;;  %v2470_v19 = vld [vmem:[#allocation2 + $0x8] ss:$0 sps:$4 sm:$0xff]   ;;  %vm258_vm11 = vcmask 1043456   ;;  %v335_v61 = vld [vmem:[%s3455_s4 + $0x10] sm:$0xff] }
  0x4f   :  { %2465 = vset.pattern.permute.xlu1 %v2693_v2  ;;  %2464 = vset.pattern.permute.xlu0 %v2693_v2  ;;  %v333_v59 = vld [vmem:[%s3455_s4] sm:$0xff]  ;;  %v334_v60 = vld [vmem:[%s3455_s4 + $0x8] sm:$0xff]  ;;  %vm359_vm12 = vcmask 982016  }
  0x50   :  { %607 = vmatprep.mubr.bf16.mxu0 %v2693_v2 }
  0x51   :  { %123 = vrot.lane.b32.xlu1 %v2468_v1, %s2691_s1  ;;  %115 = vrot.lane.b32.xlu0 %v2468_v1, %s2692_s28 }
  0x55   :  { %131 = vrot.lane.b32.xlu1 %v2468_v1, %s2694_s9  ;;  %129 = vrot.lane.b32.xlu0 %v2466_v0, %s2694_s9 }
  0x59   :  { %139 = vrot.lane.b32.xlu1 %v2468_v1, %s2695_s22  ;;  %137 = vrot.lane.b32.xlu0 %v2466_v0, %s2695_s22 }
  0x5d   :  { %158 = vperm.xlu1 %2465, %v149_v3   ;;  %153 = vperm.xlu0 %2464, %v148_v4  }
  0x61   :  { %163 = vperm.xlu1 %2465, %v150_v5  }
  0xbf   :  { %v122_v6 = vpop.permute.xlu1 %121  ;;  %v114_v7 = vpop.permute.xlu0 %113 }
  0xc3   :  { %v124_v8 = vpop.permute.xlu1 %123  ;;  %v116_v9 = vpop.permute.xlu0 %115 }
  0xc4   :  { %183 = vmatprep.subr.bf16.mxu1 %v116_v9  ;;  %v118_v10 = vsel %vm117_vm0, %v114_v7, %v116_v9  ;;  %v126_v13 = vsel %vm125_vm1, %v122_v6, %v124_v8 }
  0xc5   :  { %184 = vmatpush1.bf16.msra.mxu1 %v118_v10 }
  0xc6   :  { %185 = vmatprep.subr.bf16.mxu1 %v124_v8 }
  0xc7   :  { %v132_v11 = vpop.permute.xlu1 %131  ;;  %v130_v12 = vpop.permute.xlu0 %129 }
  0xc8   :  { %v134_v14 = vsel %vm133_vm2, %v130_v12, %v132_v11 }
  0xc9   :  { %186 = vmatpush1.bf16.msra.mxu1 %v126_v13 }
  0xca   :  { %187 = vmatprep.subr.bf16.mxu1 %v132_v11 }
  0xcb   :  { %v140_v15 = vpop.permute.xlu1 %139  ;;  %v138_v16 = vpop.permute.xlu0 %137 }
  0xcc   :  { %v142_v17 = vsel %vm141_vm3, %v138_v16, %v140_v15 }
  0xcd   :  { %188 = vmatpush1.bf16.msra.mxu1 %v134_v14 }
  0xce   :  { %189 = vmatprep.subr.bf16.mxu1 %v140_v15 }
  0xd1   :  { %190 = vmatpush1.bf16.msra.mxu1 %v142_v17 }
  0xd4   :  { %2359 = vmatmul.mubr.msk.bf16.vlgmr.msra.gmra.mrb[0].mxu1 %vm174_vm4, %v2469_v18 }
  0xd5   :  { %223 = vmatprep.mubr.bf16.mxu1 %v2693_v2 }
  0xdc   :  { %2360 = vmatmul.mubr.msk.bf16.gmra.mrb[4].mxu1 %vm174_vm4, %v2470_v19  ;;  %v154_v20 = vpop.permute.xlu0 %153  ;;  %v159_v24 = vpop.permute.xlu1 %158 }
  0xdd   :  { %404 = vmatprep.mubr.bf16.mxu1 %v2693_v2 }
  0xe0   :  { %v164_v39 = vpop.permute.xlu1 %163 }
 0x1a7   :  { %v215_v21 = vpop.f32.mrb[0].mxu1 }
 0x1a8   :  { %v216_v22 = vadd.f32 %v215_v21, %v154_v20  ;;  %v217_v23 = vpop.f32.mrb[1].mxu1 }
 0x1a9   :  { %v218_v25 = vadd.f32 %v217_v23, %v154_v20  ;;  %v219_v26 = vpop.f32.mrb[2].mxu1 }
 0x1aa   :  { %v238_v27 = vmul.f32 0.01, %v216_v22  ;;  %v220_v28 = vadd.f32 %v219_v26, %v159_v24  ;;  %v221_v29 = vpop.f32.mrb[3].mxu1  ;;  %vm232_vm5 = vcmp.gt.f32.partialorder %v216_v22, 0.0 }
 0x1ab   :  { %v239_v30 = vmul.f32 0.01, %v218_v25  ;;  %v222_v31 = vadd.f32 %v221_v29, %v159_v24  ;;  %vm233_vm6 = vcmp.gt.f32.partialorder %v218_v25, 0.0  ;;  %v2472_v29 = vld [vmem:[#allocation5 + $0x8] ss:$0 sps:$4 sm:$0xff]  }
 0x1ac   :  { %vm234_vm7 = vcmp.gt.f32.partialorder %v220_v28, 0.0  ;;  %v240_v32 = vmul.f32 0.01, %v220_v28  ;;  %v244_v34 = vsel %vm232_vm5, %v216_v22, %v238_v27 }
 0x1ad   :  { %vm235_vm8 = vcmp.gt.f32.partialorder %v222_v31, 0.0  ;;  %v241_v33 = vmul.f32 0.01, %v222_v31  ;;  %v245_v36 = vsel %vm233_vm6, %v218_v25, %v239_v30 }
 0x1ae   :  { %v246_v35 = vsel %vm234_vm7, %v220_v28, %v240_v32  ;;  %v2471_v28 = vld [vmem:[#allocation5] sm:$0xff]  }
 0x1af   :  { %v250_v37 = vpack.c.bf16 %v246_v35, %v244_v34  ;;  %v247_v38 = vsel %vm235_vm8, %v222_v31, %v241_v33  ;;  %v225_v40 = vpop.f32.mrb[4].mxu1 }
 0x1b0   :  { %v251_v41 = vpack.c.bf16 %v247_v38, %v245_v36  ;;  %v226_v42 = vadd.f32 %v225_v40, %v164_v39  ;;  %v227_v43 = vpop.f32.mrb[5].mxu1 }
 0x1b1   :  { %v228_v44 = vadd.f32 %v227_v43, %v164_v39  ;;  %v229_v45 = vpop.f32.mrb[6].mxu1  ;;  %277 = vrot.lane.b32.xlu0 %v250_v37, %s2691_s1  ;;  %v259_v49 = vrot.slane %v250_v37, 4 }
 0x1b2   :  { %vm236_vm9 = vcmp.gt.f32.partialorder %v226_v42, 0.0  ;;  %v242_v46 = vmul.f32 0.01, %v226_v42  ;;  %v230_v47 = vpop.f32.mrb[7].mxu1  ;;  %279 = vrot.lane.b32.xlu1 %v251_v41, %s2691_s1  ;;  %372 = vmatprep.subr.bf16.mxu1 %v251_v41  ;;  %v260_v51 = vrot.slane %v251_v41, 4 }
 0x1b3   :  { %vm237_vm10 = vcmp.gt.f32.partialorder %v228_v44, 0.0  ;;  %v243_v48 = vmul.f32 0.01, %v228_v44  ;;  %373 = vmatpush1.bf16.msra.mxu1 %v250_v37 }
 0x1b4   :  { %v248_v50 = vsel %vm236_vm9, %v226_v42, %v242_v46 }
 0x1b5   :  { %v252_v52 = vpack.c.bf16 %v248_v50, %v248_v50  ;;  %v249_v53 = vsel %vm237_vm10, %v228_v44, %v243_v48  ;;  %265 = vrot.lane.b32.xlu0 %v259_v49, %s2692_s28 }
 0x1b6   :  { %v253_v54 = vpack.c.bf16 %v249_v53, %v249_v53  ;;  %267 = vrot.lane.b32.xlu1 %v260_v51, %s2692_s28 }
 0x1b7   :  { %v261_v55 = vrot.slane %v252_v52, 4 }
 0x1b8   :  { %v263_v56 = vrot.slane %v253_v54, 4 }
 0x1b9   :  { %v262_v57 = vsel %vm258_vm11, %v259_v49, %v261_v55 }
 0x1ba   :  { %269 = vrot.lane.b32.xlu0 %v262_v57, %s2692_s28  ;;  %v264_v58 = vsel %vm258_vm11, %v260_v51, %v263_v56 }
 0x1bb   :  { %271 = vrot.lane.b32.xlu1 %v264_v58, %s2692_s28 }
 0x1be   :  { %281 = vrot.lane.b32.xlu0 %v252_v52, %s2691_s1 }
 0x1bf   :  { %283 = vrot.lane.b32.xlu1 %v253_v54, %s2691_s1 }
 0x1c2   :  { %289 = vrot.lane.b32.xlu0 %v259_v49, %s2694_s9 }
 0x1c3   :  { %291 = vrot.lane.b32.xlu1 %v260_v51, %s2694_s9 }
 0x1c6   :  { %293 = vrot.lane.b32.xlu0 %v262_v57, %s2694_s9 }
 0x1c7   :  { %295 = vrot.lane.b32.xlu1 %v264_v58, %s2694_s9 }
 0x1ca   :  { %301 = vrot.lane.b32.xlu0 %v250_v37, %s2695_s22 }
 0x1cb   :  { %303 = vrot.lane.b32.xlu1 %v251_v41, %s2695_s22 }
 0x1ce   :  { %305 = vrot.lane.b32.xlu0 %v252_v52, %s2695_s22 }
 0x1cf   :  { %307 = vrot.lane.b32.xlu1 %v253_v54, %s2695_s22 }
 0x1d2   :  { %338 = vperm.xlu0 %2464, %v333_v59  }
 0x1d3   :  { %343 = vperm.xlu1 %2465, %v334_v60  }
 0x1d6   :  { %348 = vperm.xlu0 %2464, %v335_v61  }
 0x223   :  { %v278_v62 = vpop.permute.xlu0 %277 }
 0x224   :  { %v280_v63 = vpop.permute.xlu1 %279 }
 0x225   :  { %v285_v11 = vsel %vm125_vm1, %v278_v62, %v280_v63 }
 0x227   :  { %v266_v0 = vpop.permute.xlu0 %265 }
 0x228   :  { %v268_v1 = vpop.permute.xlu1 %267 }
 0x229   :  { %v273_v3 = vsel %vm117_vm0, %v266_v0, %v268_v1  ;;  %v320_v4 = vsel %vm258_vm11, %v253_v54, %v268_v1 }
 0x22a   :  { %374 = vmatprep.subr.bf16.mxu1 %v320_v4  ;;  %v316_v5 = vsel %vm258_vm11, %v252_v52, %v273_v3 }
 0x22b   :  { %375 = vmatpush1.bf16.msra.mxu1 %v316_v5 }
 0x22c   :  { %v270_v6 = vpop.permute.xlu0 %269 }
 0x22d   :  { %v272_v7 = vpop.permute.xlu1 %271 }
 0x22e   :  { %376 = vmatprep.subr.bf16.mxu1 %v272_v7  ;;  %v274_v8 = vsel %vm117_vm0, %v270_v6, %v272_v7  ;;  %v529_v6 = vld [vmem:[%s3457_s6] sm:$0xff]  ;;  %v530_v7 = vld [vmem:[%s3457_s6 + $0x8] sm:$0xff] }
 0x22f   :  { %377 = vmatpush1.bf16.msra.mxu1 %v274_v8  ;;  %v531_v8 = vld [vmem:[%s3457_s6 + $0x10] sm:$0xff] }
 0x230   :  { %378 = vmatprep.subr.bf16.mxu1 %v280_v63  ;;  %v282_v9 = vpop.permute.xlu0 %281 }
 0x231   :  { %v284_v10 = vpop.permute.xlu1 %283 }
 0x232   :  { %v286_v14 = vsel %vm125_vm1, %v282_v9, %v284_v10  ;;  %v532_v9 = vld [vmem:[%s3457_s6 + $0x18] sm:$0xff] }
 0x233   :  { %379 = vmatpush1.bf16.msra.mxu1 %v285_v11 }
 0x234   :  { %v290_v12 = vpop.permute.xlu0 %289 }
 0x235   :  { %v292_v13 = vpop.permute.xlu1 %291 }
 0x236   :  { %v297_v15 = vsel %vm133_vm2, %v290_v12, %v292_v13  ;;  %v328_v16 = vsel %vm258_vm11, %v284_v10, %v292_v13 }
 0x237   :  { %380 = vmatprep.subr.bf16.mxu1 %v328_v16  ;;  %v324_v17 = vsel %vm258_vm11, %v286_v14, %v297_v15 }
 0x238   :  { %381 = vmatpush1.bf16.msra.mxu1 %v324_v17  ;;  %v294_v18 = vpop.permute.xlu0 %293 }
 0x239   :  { %v296_v19 = vpop.permute.xlu1 %295 }
 0x23a   :  { %382 = vmatprep.subr.bf16.mxu1 %v296_v19  ;;  %v298_v20 = vsel %vm133_vm2, %v294_v18, %v296_v19 }
 0x23c   :  { %383 = vmatpush1.bf16.msra.mxu1 %v298_v20  ;;  %v302_v21 = vpop.permute.xlu0 %301 }
 0x23d   :  { %v304_v22 = vpop.permute.xlu1 %303 }
 0x23e   :  { %384 = vmatprep.subr.bf16.mxu1 %v304_v22  ;;  %v309_v23 = vsel %vm141_vm3, %v302_v21, %v304_v22 }
 0x240   :  { %385 = vmatpush1.bf16.msra.mxu1 %v309_v23  ;;  %v306_v24 = vpop.permute.xlu0 %305 }
 0x241   :  { %v308_v25 = vpop.permute.xlu1 %307 }
 0x242   :  { %v310_v26 = vsel %vm141_vm3, %v306_v24, %v308_v25  ;;  %2363 = vmatprep.subr.msk.bf16.mxu1 %vm258_vm11, %v308_v25 }
 0x243   :  { %v367_v27 = vsel %vm258_vm11, %v310_v26, 0 }
 0x244   :  { %387 = vmatpush1.bf16.msra.mxu1 %v367_v27 }
 0x247   :  { %2364 = vmatmul.mubr.msk.bf16.vlgmr.msra.gmra.mrb[8].mxu1 %vm359_vm12, %v2471_v28 }
 0x248   :  { %414 = vmatprep.mubr.bf16.mxu1 %v2693_v2 }
 0x24f   :  { %2365 = vmatmul.mubr.msk.bf16.gmra.mrb[12].mxu1 %vm359_vm12, %v2472_v29 }
 0x251   :  { %v339_v30 = vpop.permute.xlu0 %338 }
 0x252   :  { %v344_v34 = vpop.permute.xlu1 %343 }
 0x255   :  { %v349_v47 = vpop.permute.xlu0 %348 }
 0x31a   :  { %v406_v31 = vpop.f32.mrb[8].mxu1 }
 0x31b   :  { %v407_v32 = vadd.f32 %v406_v31, %v339_v30  ;;  %v408_v33 = vpop.f32.mrb[9].mxu1 }
 0x31c   :  { %v409_v35 = vadd.f32 %v408_v33, %v339_v30  ;;  %v410_v36 = vpop.f32.mrb[10].mxu1 }
 0x31d   :  { %vm423_vm13 = vcmp.gt.f32.partialorder %v407_v32, 0.0  ;;  %v429_v37 = vmul.f32 0.01, %v407_v32  ;;  %v411_v38 = vadd.f32 %v410_v36, %v344_v34  ;;  %v412_v39 = vpop.f32.mrb[11].mxu1 }
 0x31e   :  { %vm424_vm14 = vcmp.gt.f32.partialorder %v409_v35, 0.0  ;;  %v430_v40 = vmul.f32 0.01, %v409_v35  ;;  %v413_v41 = vadd.f32 %v412_v39, %v344_v34  ;;  %v2473_v39 = vld [vmem:[#allocation7] sm:$0xff]  }
 0x31f   :  { %v435_v42 = vsel %vm423_vm13, %v407_v32, %v429_v37  ;;  %vm425_vm15 = vcmp.gt.f32.partialorder %v411_v38, 0.0  ;;  %v431_v43 = vmul.f32 0.01, %v411_v38 }
 0x320   :  { %441 = vst [vmem:[#allocation10] sm:$0xff] %v435_v42  ;;  %v436_v44 = vsel %vm424_vm14, %v409_v35, %v430_v40  ;;  %vm426_vm5 = vcmp.gt.f32.partialorder %v413_v41, 0.0  ;;  %v432_v45 = vmul.f32 0.01, %v413_v41  ;;  %v2474_v40 = vld [vmem:[#allocation7 + $0x8] sm:$0xff]  }
 0x321   :  { %442 = vst.msk [vmem:[#allocation10 + $0x8] sm:$0xff] %vm359_vm12, %v436_v44  ;;  %v437_v46 = vsel %vm425_vm15, %v411_v38, %v431_v43 }
 0x322   :  { %443 = vst [vmem:[#allocation10 + $0x10] sm:$0xff] %v437_v46  ;;  %v447_v48 = vpack.c.bf16 %v437_v46, %v435_v42  ;;  %v438_v49 = vsel %vm426_vm5, %v413_v41, %v432_v45  ;;  %v416_v50 = vpop.f32.mrb[12].mxu1 }
 0x323   :  { %444 = vst.msk [vmem:[#allocation10 + $0x18] sm:$0xff] %vm359_vm12, %v438_v49  ;;  %v448_v51 = vpack.c.bf16 %v438_v49, %v436_v44  ;;  %v417_v52 = vadd.f32 %v416_v50, %v349_v47  ;;  %v418_v53 = vpop.f32.mrb[13].mxu1 }
 0x324   :  { %v419_v54 = vadd.f32 %v418_v53, %v349_v47  ;;  %v420_v55 = vpop.f32.mrb[14].mxu1  ;;  %473 = vrot.lane.b32.xlu1 %v447_v48, %s2691_s1  ;;  %v455_v59 = vrot.slane %v447_v48, 4 }
 0x325   :  { %vm427_vm6 = vcmp.gt.f32.partialorder %v417_v52, 0.0  ;;  %v433_v56 = vmul.f32 0.01, %v417_v52  ;;  %v421_v57 = vpop.f32.mrb[15].mxu1  ;;  %475 = vrot.lane.b32.xlu0 %v448_v51, %s2691_s1  ;;  %575 = vmatprep.subr.bf16.mxu0 %v448_v51  ;;  %v456_v61 = vrot.slane %v448_v51, 4 }
 0x326   :  { %vm428_vm7 = vcmp.gt.f32.partialorder %v419_v54, 0.0  ;;  %v434_v58 = vmul.f32 0.01, %v419_v54  ;;  %576 = vmatpush1.bf16.msra.mxu0 %v447_v48 }
 0x327   :  { %v439_v60 = vsel %vm427_vm6, %v417_v52, %v433_v56 }
 0x328   :  { %445 = vst [vmem:[#allocation10 + $0x20] sm:$0xff] %v439_v60  ;;  %v449_v62 = vpack.c.bf16 %v439_v60, %v439_v60  ;;  %v440_v63 = vsel %vm428_vm7, %v419_v54, %v434_v58  ;;  %461 = vrot.lane.b32.xlu1 %v455_v59, %s2692_s28  ;;  %vm762_vm7 = vcmask 261120  }
 0x329   :  { %446 = vst.msk [vmem:[#allocation10 + $0x28] sm:$0xff] %vm359_vm12, %v440_v63  ;;  %v450_v0 = vpack.c.bf16 %v440_v63, %v440_v63  ;;  %463 = vrot.lane.b32.xlu0 %v456_v61, %s2692_s28 }
 0x32a   :  { %v457_v1 = vrot.slane %v449_v62, 4 }
 0x32b   :  { %v459_v3 = vrot.slane %v450_v0, 4 }
 0x32c   :  { %v458_v4 = vsel %vm258_vm11, %v455_v59, %v457_v1 }
 0x32d   :  { %465 = vrot.lane.b32.xlu1 %v458_v4, %s2692_s28  ;;  %v460_v5 = vsel %vm258_vm11, %v456_v61, %v459_v3 }
 0x32e   :  { %467 = vrot.lane.b32.xlu0 %v460_v5, %s2692_s28 }
 0x331   :  { %477 = vrot.lane.b32.xlu1 %v449_v62, %s2691_s1 }
 0x332   :  { %479 = vrot.lane.b32.xlu0 %v450_v0, %s2691_s1 }
 0x335   :  { %485 = vrot.lane.b32.xlu1 %v455_v59, %s2694_s9 }
 0x336   :  { %487 = vrot.lane.b32.xlu0 %v456_v61, %s2694_s9 }
 0x339   :  { %489 = vrot.lane.b32.xlu1 %v458_v4, %s2694_s9 }
 0x33a   :  { %491 = vrot.lane.b32.xlu0 %v460_v5, %s2694_s9 }
 0x33d   :  { %497 = vrot.lane.b32.xlu1 %v447_v48, %s2695_s22 }
 0x33e   :  { %499 = vrot.lane.b32.xlu0 %v448_v51, %s2695_s22 }
 0x341   :  { %501 = vrot.lane.b32.xlu1 %v449_v62, %s2695_s22 }
 0x342   :  { %503 = vrot.lane.b32.xlu0 %v450_v0, %s2695_s22 }
 0x345   :  { %535 = vperm.xlu1 %2465, %v529_v6  }
 0x346   :  { %540 = vperm.xlu0 %2464, %v530_v7  }
 0x349   :  { %545 = vperm.xlu1 %2465, %v531_v8  }
 0x34a   :  { %550 = vperm.xlu0 %2464, %v532_v9  }
 0x396   :  { %v474_v10 = vpop.permute.xlu1 %473 }
 0x397   :  { %v476_v11 = vpop.permute.xlu0 %475 }
 0x398   :  { %v481_v22 = vsel %vm125_vm1, %v474_v10, %v476_v11 }
 0x39a   :  { %v462_v12 = vpop.permute.xlu1 %461 }
 0x39b   :  { %v464_v13 = vpop.permute.xlu0 %463 }
 0x39c   :  { %v469_v14 = vsel %vm117_vm0, %v462_v12, %v464_v13  ;;  %v515_v15 = vsel %vm258_vm11, %v450_v0, %v464_v13 }
 0x39d   :  { %577 = vmatprep.subr.bf16.mxu0 %v515_v15  ;;  %v511_v16 = vsel %vm258_vm11, %v449_v62, %v469_v14 }
 0x39e   :  { %578 = vmatpush1.bf16.msra.mxu0 %v511_v16 }
 0x39f   :  { %v466_v17 = vpop.permute.xlu1 %465 }
 0x3a0   :  { %v468_v18 = vpop.permute.xlu0 %467 }
 0x3a1   :  { %579 = vmatprep.subr.bf16.mxu0 %v468_v18  ;;  %v470_v19 = vsel %vm117_vm0, %v466_v17, %v468_v18  ;;  %v2477_v18 = vld [vmem:[%s3458_s7 + $0x4] ss:$8 sps:$4 sm:$0xff]  }
 0x3a2   :  { %580 = vmatpush1.bf16.msra.mxu0 %v470_v19  ;;  %2375 = vmatprep.mubr.msk.bf16.mxu1 %vm762_vm7, %v2477_v18  ;;  %v720_v19 = vld [vmem:[%s3459_s8] sm:$0xff] }
 0x3a3   :  { %v478_v20 = vpop.permute.xlu1 %477  ;;  %581 = vmatprep.subr.bf16.mxu0 %v476_v11 }
 0x3a4   :  { %v480_v21 = vpop.permute.xlu0 %479 }
 0x3a5   :  { %v482_v25 = vsel %vm125_vm1, %v478_v20, %v480_v21  ;;  %v721_v20 = vld [vmem:[%s3459_s8 + $0x8] sm:$0xff] }
 0x3a6   :  { %582 = vmatpush1.bf16.msra.mxu0 %v481_v22  ;;  %v723_v22 = vld [vmem:[%s3459_s8 + $0x18] sm:$0xff] }
 0x3a7   :  { %v486_v23 = vpop.permute.xlu1 %485 }
 0x3a8   :  { %v488_v24 = vpop.permute.xlu0 %487 }
 0x3a9   :  { %v493_v26 = vsel %vm133_vm2, %v486_v23, %v488_v24  ;;  %v523_v27 = vsel %vm258_vm11, %v480_v21, %v488_v24  ;;  %v722_v21 = vld [vmem:[%s3459_s8 + $0x10] sm:$0xff] }
 0x3aa   :  { %583 = vmatprep.subr.bf16.mxu0 %v523_v27  ;;  %v519_v28 = vsel %vm258_vm11, %v482_v25, %v493_v26 }
 0x3ab   :  { %v490_v29 = vpop.permute.xlu1 %489  ;;  %584 = vmatpush1.bf16.msra.mxu0 %v519_v28 }
 0x3ac   :  { %v492_v30 = vpop.permute.xlu0 %491 }
 0x3ad   :  { %585 = vmatprep.subr.bf16.mxu0 %v492_v30  ;;  %v494_v31 = vsel %vm133_vm2, %v490_v29, %v492_v30 }
 0x3af   :  { %v498_v32 = vpop.permute.xlu1 %497  ;;  %586 = vmatpush1.bf16.msra.mxu0 %v494_v31 }
 0x3b0   :  { %v500_v33 = vpop.permute.xlu0 %499 }
 0x3b1   :  { %587 = vmatprep.subr.bf16.mxu0 %v500_v33  ;;  %v505_v34 = vsel %vm141_vm3, %v498_v32, %v500_v33 }
 0x3b3   :  { %v502_v35 = vpop.permute.xlu1 %501  ;;  %588 = vmatpush1.bf16.msra.mxu0 %v505_v34 }
 0x3b4   :  { %v504_v36 = vpop.permute.xlu0 %503 }
 0x3b5   :  { %2368 = vmatprep.subr.msk.bf16.mxu0 %vm258_vm11, %v504_v36  ;;  %v506_v37 = vsel %vm141_vm3, %v502_v35, %v504_v36 }
 0x3b6   :  { %v570_v38 = vsel %vm258_vm11, %v506_v37, 0 }
 0x3b7   :  { %590 = vmatpush1.bf16.msra.mxu0 %v570_v38 }
 0x3ba   :  { %2369 = vmatmul.mubr.msk.bf16.vlgmr.msra.gmra.mrb[0].mxu0 %vm359_vm12, %v2473_v39 }
 0x3bb   :  { %617 = vmatprep.mubr.bf16.mxu0 %v2693_v2 }
 0x3c2   :  { %2370 = vmatmul.mubr.msk.bf16.gmra.mrb[4].mxu0 %vm359_vm12, %v2474_v40 }
 0x3c4   :  { %v536_v41 = vpop.permute.xlu1 %535 }
 0x3c5   :  { %v541_v45 = vpop.permute.xlu0 %540 }
 0x3c8   :  { %v546_v57 = vpop.permute.xlu1 %545 }
 0x3c9   :  { %v551_v1 = vpop.permute.xlu0 %550 }
 0x48d   :  { %v609_v42 = vpop.f32.mrb[0].mxu0 }
 0x48e   :  { %v610_v43 = vadd.f32 %v609_v42, %v536_v41  ;;  %v611_v44 = vpop.f32.mrb[1].mxu0 }
 0x48f   :  { %v612_v46 = vadd.f32 %v611_v44, %v536_v41  ;;  %v613_v47 = vpop.f32.mrb[2].mxu0 }
 0x490   :  { %v636_v48 = vmul.f32 0.01, %v610_v43  ;;  %v614_v49 = vadd.f32 %v613_v47, %v541_v45  ;;  %v615_v50 = vpop.f32.mrb[3].mxu0  ;;  %vm628_vm8 = vcmp.gt.f32.partialorder %v610_v43, 0.0  ;;  %v2475_v47 = vld [vmem:[%s3458_s7] ss:$8 sps:$4 sm:$0xff]  }
 0x491   :  { %v637_v51 = vmul.f32 0.01, %v612_v46  ;;  %v616_v52 = vadd.f32 %v615_v50, %v541_v45  ;;  %vm629_vm9 = vcmp.gt.f32.partialorder %v612_v46, 0.0 }
 0x492   :  { %vm630_vm10 = vcmp.gt.f32.partialorder %v614_v49, 0.0  ;;  %v638_v53 = vmul.f32 0.01, %v614_v49  ;;  %v644_v55 = vsel %vm628_vm8, %v610_v43, %v636_v48  ;;  %v2478_v48 = vld [vmem:[%s3458_s7 + $0x14] ss:$8 sps:$4 sm:$0xff]  }
 0x493   :  { %vm631_vm13 = vcmp.gt.f32.partialorder %v616_v52, 0.0  ;;  %v639_v54 = vmul.f32 0.01, %v616_v52  ;;  %v645_v58 = vsel %vm629_vm9, %v612_v46, %v637_v51 }
 0x494   :  { %v646_v56 = vsel %vm630_vm10, %v614_v49, %v638_v53  ;;  %v2480_v49 = vld [vmem:[%s3458_s7 + $0x10] ss:$8 sps:$4 sm:$0xff]  }
 0x495   :  { %v652_v59 = vpack.c.bf16 %v646_v56, %v644_v55  ;;  %v647_v60 = vsel %vm631_vm13, %v616_v52, %v639_v54  ;;  %v619_v61 = vpop.f32.mrb[4].mxu0 }
 0x496   :  { %v653_v62 = vpack.c.bf16 %v647_v60, %v645_v58  ;;  %v620_v63 = vadd.f32 %v619_v61, %v546_v57  ;;  %v621_v0 = vpop.f32.mrb[5].mxu0 }
 0x497   :  { %v622_v3 = vadd.f32 %v621_v0, %v546_v57  ;;  %v623_v4 = vpop.f32.mrb[6].mxu0  ;;  %660 = vrot.lane.b32.xlu1 %v652_v59, %s2692_s28 }
 0x498   :  { %v640_v5 = vmul.f32 0.01, %v620_v63  ;;  %v624_v6 = vadd.f32 %v623_v4, %v551_v1  ;;  %v625_v7 = vpop.f32.mrb[7].mxu0  ;;  %662 = vrot.lane.b32.xlu0 %v653_v62, %s2692_s28  ;;  %769 = vmatprep.subr.bf16.mxu1 %v653_v62  ;;  %vm632_vm14 = vcmp.gt.f32.partialorder %v620_v63, 0.0 }
 0x499   :  { %v641_v8 = vmul.f32 0.01, %v622_v3  ;;  %v626_v9 = vadd.f32 %v625_v7, %v551_v1  ;;  %770 = vmatpush1.bf16.msra.mxu1 %v652_v59  ;;  %vm633_vm15 = vcmp.gt.f32.partialorder %v622_v3, 0.0 }
 0x49a   :  { %vm634_vm5 = vcmp.gt.f32.partialorder %v624_v6, 0.0  ;;  %v642_v10 = vmul.f32 0.01, %v624_v6  ;;  %v648_v12 = vsel %vm632_vm14, %v620_v63, %v640_v5 }
 0x49b   :  { %vm635_vm6 = vcmp.gt.f32.partialorder %v626_v9, 0.0  ;;  %v643_v11 = vmul.f32 0.01, %v626_v9  ;;  %v649_v14 = vsel %vm633_vm15, %v622_v3, %v641_v8 }
 0x49c   :  { %v650_v13 = vsel %vm634_vm5, %v624_v6, %v642_v10 }
 0x49d   :  { %v654_v15 = vpack.c.bf16 %v650_v13, %v648_v12  ;;  %v651_v16 = vsel %vm635_vm6, %v626_v9, %v643_v11 }
 0x49e   :  { %v655_v17 = vpack.c.bf16 %v651_v16, %v649_v14 }
 0x49f   :  { %664 = vrot.lane.b32.xlu1 %v654_v15, %s2692_s28 }
 0x4a0   :  { %666 = vrot.lane.b32.xlu0 %v655_v17, %s2692_s28  ;;  %771 = vmatprep.subr.bf16.mxu1 %v655_v17 }
 0x4a1   :  { %772 = vmatpush1.bf16.msra.mxu1 %v654_v15 }
 0x4a3   :  { %674 = vrot.lane.b32.xlu1 %v652_v59, %s2691_s1 }
 0x4a4   :  { %676 = vrot.lane.b32.xlu0 %v653_v62, %s2691_s1 }
 0x4a7   :  { %678 = vrot.lane.b32.xlu1 %v654_v15, %s2691_s1 }
 0x4a8   :  { %680 = vrot.lane.b32.xlu0 %v655_v17, %s2691_s1 }
 0x4ab   :  { %688 = vrot.lane.b32.xlu1 %v652_v59, %s2694_s9 }
 0x4ac   :  { %690 = vrot.lane.b32.xlu0 %v653_v62, %s2694_s9 }
 0x4af   :  { %692 = vrot.lane.b32.xlu1 %v654_v15, %s2694_s9 }
 0x4b0   :  { %694 = vrot.lane.b32.xlu0 %v655_v17, %s2694_s9 }
 0x4b3   :  { %702 = vrot.lane.b32.xlu1 %v652_v59, %s2695_s22 }
 0x4b4   :  { %704 = vrot.lane.b32.xlu0 %v653_v62, %s2695_s22 }
 0x4b7   :  { %706 = vrot.lane.b32.xlu1 %v654_v15, %s2695_s22 }
 0x4b8   :  { %708 = vrot.lane.b32.xlu0 %v655_v17, %s2695_s22 }
 0x4bb   :  { %726 = vperm.xlu1 %2465, %v720_v19  }
 0x4bc   :  { %731 = vperm.xlu0 %2464, %v721_v20  }
 0x4bf   :  { %736 = vperm.xlu1 %2465, %v722_v21  }
 0x4c0   :  { %741 = vperm.xlu0 %2464, %v723_v22  }
 0x509   :  { %v661_v23 = vpop.permute.xlu1 %660 }
 0x50a   :  { %v663_v24 = vpop.permute.xlu0 %662 }
 0x50b   :  { %773 = vmatprep.subr.bf16.mxu1 %v663_v24  ;;  %v668_v25 = vsel %vm117_vm0, %v661_v23, %v663_v24 }
 0x50c   :  { %774 = vmatpush1.bf16.msra.mxu1 %v668_v25 }
 0x511   :  { %v665_v26 = vpop.permute.xlu1 %664 }
 0x512   :  { %v667_v27 = vpop.permute.xlu0 %666 }
 0x513   :  { %775 = vmatprep.subr.bf16.mxu1 %v667_v27  ;;  %v669_v28 = vsel %vm117_vm0, %v665_v26, %v667_v27  ;;  %v2486_v27 = vld [vmem:[#allocation8 + $0x4] ss:$8 sps:$4 sm:$0xff]  }
 0x514   :  { %776 = vmatpush1.bf16.msra.mxu1 %v669_v28  ;;  %2381 = vmatprep.mubr.msk.bf16.mxu0 %vm762_vm7, %v2486_v27  ;;  %v3043_v28 = vld [vmem:[%s3451_s0 + $0x10] ss:$8 sps:$4 sm:$0xff]  }
 0x515   :  { %v675_v29 = vpop.permute.xlu1 %674 }
 0x516   :  { %v677_v30 = vpop.permute.xlu0 %676 }
 0x517   :  { %777 = vmatprep.subr.bf16.mxu1 %v677_v30  ;;  %v682_v31 = vsel %vm125_vm1, %v675_v29, %v677_v30  ;;  %v3049_v29 = vld [vmem:[%s3451_s0 + $0x14] ss:$8 sps:$4 sm:$0xff]   ;;  %v2538_v30 = vld [vmem:[%s3453_s2] sm:$0xff] }
 0x518   :  { %778 = vmatpush1.bf16.msra.mxu1 %v682_v31  ;;  %v2539_v31 = vld [vmem:[%s3453_s2 + $0x8] sm:$0xff] }
 0x519   :  { %v679_v32 = vpop.permute.xlu1 %678 }
 0x51a   :  { %v681_v33 = vpop.permute.xlu0 %680 }
 0x51b   :  { %779 = vmatprep.subr.bf16.mxu1 %v681_v33  ;;  %v683_v34 = vsel %vm125_vm1, %v679_v32, %v681_v33  ;;  %v2492_v32 = vld [vmem:[%s3462_s11] sm:$0xff]   ;;  %v2540_v33 = vld [vmem:[%s3453_s2 + $0x10] sm:$0xff] }
 0x51c   :  { %780 = vmatpush1.bf16.msra.mxu1 %v683_v34  ;;  %v2493_v34 = vld [vmem:[%s3462_s11 + $0x8] sm:$0xff]  }
 0x51d   :  { %v689_v35 = vpop.permute.xlu1 %688 }
 0x51e   :  { %v691_v36 = vpop.permute.xlu0 %690 }
 0x51f   :  { %781 = vmatprep.subr.bf16.mxu1 %v691_v36  ;;  %v696_v37 = vsel %vm133_vm2, %v689_v35, %v691_v36  ;;  %v2494_v35 = vld [vmem:[%s3462_s11 + $0x10] sm:$0xff]   ;;  %v2495_v36 = vld [vmem:[%s3462_s11 + $0x18] sm:$0xff]  }
 0x520   :  { %782 = vmatpush1.bf16.msra.mxu1 %v696_v37  ;;  %v2496_v37 = vld [vmem:[%s3462_s11 + $0x20] sm:$0xff]  }
 0x521   :  { %v693_v38 = vpop.permute.xlu1 %692 }
 0x522   :  { %v695_v39 = vpop.permute.xlu0 %694 }
 0x523   :  { %783 = vmatprep.subr.bf16.mxu1 %v695_v39  ;;  %v697_v40 = vsel %vm133_vm2, %v693_v38, %v695_v39  ;;  %v2497_v38 = vld [vmem:[%s3462_s11 + $0x28] sm:$0xff]   ;;  %v2498_v39 = vld [vmem:[%s3462_s11 + $0x30] sm:$0xff]  }
 0x524   :  { %784 = vmatpush1.bf16.msra.mxu1 %v697_v40  ;;  %v2499_v40 = vld [vmem:[%s3462_s11 + $0x38] sm:$0xff]  }
 0x525   :  { %v703_v41 = vpop.permute.xlu1 %702 }
 0x526   :  { %v705_v42 = vpop.permute.xlu0 %704 }
 0x527   :  { %785 = vmatprep.subr.bf16.mxu1 %v705_v42  ;;  %v710_v43 = vsel %vm141_vm3, %v703_v41, %v705_v42  ;;  %v2500_v41 = vld [vmem:[%s3462_s11 + $0x40] sm:$0xff]   ;;  %v2501_v42 = vld [vmem:[%s3462_s11 + $0x48] sm:$0xff]  }
 0x528   :  { %786 = vmatpush1.bf16.msra.mxu1 %v710_v43  ;;  %v2502_v43 = vld [vmem:[%s3462_s11 + $0x50] sm:$0xff]  }
 0x529   :  { %v707_v44 = vpop.permute.xlu1 %706 }
 0x52a   :  { %v709_v45 = vpop.permute.xlu0 %708 }
 0x52b   :  { %787 = vmatprep.subr.bf16.mxu1 %v709_v45  ;;  %v711_v46 = vsel %vm141_vm3, %v707_v44, %v709_v45  ;;  %v2503_v44 = vld [vmem:[%s3462_s11 + $0x58] sm:$0xff]   ;;  %v2504_v45 = vld [vmem:[%s3462_s11 + $0x60] sm:$0xff]  }
 0x52c   :  { %788 = vmatpush1.bf16.msra.mxu1 %v711_v46 }
 0x52d   :  { %1149 = vmatprep.subr.bf16.mxu1 %v2693_v2 }
 0x52f   :  { %802 = vmatmul.mubr.bf16.vlgmr.msra.gmra.mrb[16].mxu1 %v2475_v47 }
 0x530   :  { %2376 = vmatprep.mubr.msk.bf16.mxu1 %vm762_vm7, %v2478_v48  ;;  %1150 = vmatpush1.bf16.msra.mxu1 %v2492_v32 }
 0x531   :  { %1151 = vmatprep.subr.bf16.mxu1 %v2693_v2 }
 0x534   :  { %1152 = vmatpush1.bf16.msra.mxu1 %v2493_v34 }
 0x535   :  { %1153 = vmatprep.subr.bf16.mxu1 %v2693_v2 }
 0x537   :  { %812 = vmatmul.mubr.bf16.gmra.mrb[20].mxu1 %v2480_v49 }
 0x538   :  { %1154 = vmatpush1.bf16.msra.mxu1 %v2494_v35 }
 0x539   :  { %1155 = vmatprep.subr.bf16.mxu1 %v2693_v2 }
 0x53a   :  { %v727_v50 = vpop.permute.xlu1 %726 }
 0x53b   :  { %v732_v54 = vpop.permute.xlu0 %731 }
 0x53c   :  { %1156 = vmatpush1.bf16.msra.mxu1 %v2495_v36 }
 0x53d   :  { %1157 = vmatprep.subr.bf16.mxu1 %v2693_v2 }
 0x53e   :  { %v737_v3 = vpop.permute.xlu1 %736 }
 0x53f   :  { %v742_v11 = vpop.permute.xlu0 %741 }
 0x540   :  { %1158 = vmatpush1.bf16.msra.mxu1 %v2496_v37 }
 0x541   :  { %1159 = vmatprep.subr.bf16.mxu1 %v2693_v2 }
 0x544   :  { %1160 = vmatpush1.bf16.msra.mxu1 %v2497_v38 }
 0x545   :  { %1161 = vmatprep.subr.bf16.mxu1 %v2693_v2 }
 0x548   :  { %1162 = vmatpush1.bf16.msra.mxu1 %v2498_v39 }
 0x549   :  { %1163 = vmatprep.subr.bf16.mxu1 %v2693_v2 }
 0x54c   :  { %1164 = vmatpush1.bf16.msra.mxu1 %v2499_v40 }
 0x54d   :  { %1165 = vmatprep.subr.bf16.mxu1 %v2693_v2 }
 0x550   :  { %1166 = vmatpush1.bf16.msra.mxu1 %v2500_v41 }
 0x551   :  { %1167 = vmatprep.subr.bf16.mxu1 %v2693_v2 }
 0x554   :  { %1168 = vmatpush1.bf16.msra.mxu1 %v2501_v42 }
 0x555   :  { %1169 = vmatprep.subr.bf16.mxu1 %v2693_v2 }
 0x558   :  { %1170 = vmatpush1.bf16.msra.mxu1 %v2502_v43 }
 0x559   :  { %1171 = vmatprep.subr.bf16.mxu1 %v2693_v2 }
 0x55c   :  { %1172 = vmatpush1.bf16.msra.mxu1 %v2503_v44 }
 0x55d   :  { %1173 = vmatprep.subr.bf16.mxu1 %v2693_v2 }
 0x560   :  { %1174 = vmatpush1.bf16.msra.mxu1 %v2504_v45 }
 0x561   :  { %1175 = vmatprep.subr.bf16.mxu1 %v2693_v2 }
 0x602   :  { %v803_v51 = vpop.f32.mrb[16].mxu1 }
 0x603   :  { %v804_v52 = vadd.f32 %v803_v51, %v727_v50  ;;  %v805_v53 = vpop.f32.mrb[17].mxu1 }
 0x604   :  { %v806_v55 = vadd.f32 %v805_v53, %v727_v50  ;;  %v807_v56 = vpop.f32.mrb[18].mxu1 }
 0x605   :  { %v830_v57 = vmul.f32 0.01, %v804_v52  ;;  %v808_v58 = vadd.f32 %v807_v56, %v732_v54  ;;  %v809_v59 = vpop.f32.mrb[19].mxu1  ;;  %vm822_vm8 = vcmp.gt.f32.partialorder %v804_v52, 0.0 }
 0x606   :  { %v831_v60 = vmul.f32 0.01, %v806_v55  ;;  %v810_v61 = vadd.f32 %v809_v59, %v732_v54  ;;  %vm823_vm9 = vcmp.gt.f32.partialorder %v806_v55, 0.0 }
 0x607   :  { %vm824_vm10 = vcmp.gt.f32.partialorder %v808_v58, 0.0  ;;  %v832_v62 = vmul.f32 0.01, %v808_v58  ;;  %v838_v0 = vsel %vm822_vm8, %v804_v52, %v830_v57  ;;  %vm1145_vm8 = vcmask 1045504  }
 0x608   :  { %vm825_vm13 = vcmp.gt.f32.partialorder %v810_v61, 0.0  ;;  %v833_v63 = vmul.f32 0.01, %v810_v61  ;;  %v839_v4 = vsel %vm823_vm9, %v806_v55, %v831_v60 }
 0x609   :  { %v840_v1 = vsel %vm824_vm10, %v808_v58, %v832_v62 }
 0x60a   :  { %v846_v5 = vpack.c.bf16 %v840_v1, %v838_v0  ;;  %v841_v6 = vsel %vm825_vm13, %v810_v61, %v833_v63  ;;  %v813_v7 = vpop.f32.mrb[20].mxu1 }
 0x60b   :  { %v847_v8 = vpack.c.bf16 %v841_v6, %v839_v4  ;;  %v814_v9 = vadd.f32 %v813_v7, %v737_v3  ;;  %v815_v10 = vpop.f32.mrb[21].mxu1  ;;  %v2484_v7 = vld [vmem:[#allocation8] ss:$8 sps:$4 sm:$0xff]  }
 0x60c   :  { %v816_v12 = vadd.f32 %v815_v10, %v737_v3  ;;  %v817_v13 = vpop.f32.mrb[22].mxu1  ;;  %854 = vrot.lane.b32.xlu1 %v846_v5, %s2692_s28 }
 0x60d   :  { %v834_v14 = vmul.f32 0.01, %v814_v9  ;;  %v818_v15 = vadd.f32 %v817_v13, %v742_v11  ;;  %v819_v16 = vpop.f32.mrb[23].mxu1  ;;  %856 = vrot.lane.b32.xlu0 %v847_v8, %s2692_s28  ;;  %938 = vmatprep.subr.bf16.mxu0 %v847_v8  ;;  %vm826_vm14 = vcmp.gt.f32.partialorder %v814_v9, 0.0 }
 0x60e   :  { %v835_v17 = vmul.f32 0.01, %v816_v12  ;;  %v820_v18 = vadd.f32 %v819_v16, %v742_v11  ;;  %939 = vmatpush1.bf16.msra.mxu0 %v846_v5  ;;  %vm827_vm15 = vcmp.gt.f32.partialorder %v816_v12, 0.0 }
 0x60f   :  { %vm828_vm5 = vcmp.gt.f32.partialorder %v818_v15, 0.0  ;;  %v836_v19 = vmul.f32 0.01, %v818_v15  ;;  %v842_v21 = vsel %vm826_vm14, %v814_v9, %v834_v14  ;;  %v2489_v14 = vld [vmem:[#allocation8 + $0x10] ss:$8 sps:$4 sm:$0xff]  }
 0x610   :  { %vm829_vm6 = vcmp.gt.f32.partialorder %v820_v18, 0.0  ;;  %v837_v20 = vmul.f32 0.01, %v820_v18  ;;  %v843_v23 = vsel %vm827_vm15, %v816_v12, %v835_v17 }
 0x611   :  { %v844_v22 = vsel %vm828_vm5, %v818_v15, %v836_v19 }
 0x612   :  { %v848_v24 = vpack.c.bf16 %v844_v22, %v842_v21  ;;  %v845_v25 = vsel %vm829_vm6, %v820_v18, %v837_v20  ;;  %v2490_v22 = vld [vmem:[#allocation2] sm:$0xff]  }
 0x613   :  { %v849_v26 = vpack.c.bf16 %v845_v25, %v843_v23  ;;  %v2491_v23 = vld [vmem:[#allocation2 + $0x8] ss:$0 sps:$4 sm:$0xff]   ;;  %v2506_v25 = vld [vmem:[%s3462_s11 + $0x70] sm:$0x3f]  }
 0x614   :  { %858 = vrot.lane.b32.xlu1 %v848_v24, %s2692_s28 }
 0x615   :  { %860 = vrot.lane.b32.xlu0 %v849_v26, %s2692_s28  ;;  %940 = vmatprep.subr.bf16.mxu0 %v849_v26 }
 0x616   :  { %941 = vmatpush1.bf16.msra.mxu0 %v848_v24 }
 0x618   :  { %868 = vrot.lane.b32.xlu1 %v846_v5, %s2691_s1 }
 0x619   :  { %870 = vrot.lane.b32.xlu0 %v847_v8, %s2691_s1 }
 0x61c   :  { %872 = vrot.lane.b32.xlu1 %v848_v24, %s2691_s1 }
 0x61d   :  { %874 = vrot.lane.b32.xlu0 %v849_v26, %s2691_s1 }
 0x620   :  { %882 = vrot.lane.b32.xlu1 %v846_v5, %s2694_s9 }
 0x621   :  { %884 = vrot.lane.b32.xlu0 %v847_v8, %s2694_s9 }
 0x624   :  { %886 = vrot.lane.b32.xlu1 %v848_v24, %s2694_s9 }
 0x625   :  { %888 = vrot.lane.b32.xlu0 %v849_v26, %s2694_s9 }
 0x628   :  { %896 = vrot.lane.b32.xlu1 %v846_v5, %s2695_s22 }
 0x629   :  { %898 = vrot.lane.b32.xlu0 %v847_v8, %s2695_s22  ;;  %v2487_v8 = vld [vmem:[#allocation8 + $0x14] ss:$8 sps:$4 sm:$0xff]  }
 0x62c   :  { %900 = vrot.lane.b32.xlu1 %v848_v24, %s2695_s22  ;;  %v2505_v24 = vld [vmem:[%s3462_s11 + $0x68] sm:$0xff]  }
 0x62d   :  { %902 = vrot.lane.b32.xlu0 %v849_v26, %s2695_s22  ;;  %1176 = vmatpush1.bf16.msra.mxu1 %v2505_v24  ;;  %v1147_v26 = vsel %vm1145_vm8, %v2506_v25, 0 }
 0x62e   :  { %1177 = vmatprep.subr.bf16.mxu1 %v2693_v2 }
 0x630   :  { %1228 = vrot.lane.b32.xlu1 %v3043_v28, %s2692_s28 }
 0x631   :  { %1230 = vrot.lane.b32.xlu0 %v3049_v29, %s2692_s28  ;;  %1178 = vmatpush1.bf16.msra.mxu1 %v1147_v26 }
 0x634   :  { %1235 = vrot.lane.b32.xlu1 %v3043_v28, %s2691_s1 }
 0x635   :  { %1237 = vrot.lane.b32.xlu0 %v3049_v29, %s2691_s1 }
 0x638   :  { %1242 = vrot.lane.b32.xlu1 %v3043_v28, %s2694_s9 }
 0x639   :  { %1244 = vrot.lane.b32.xlu0 %v3049_v29, %s2694_s9 }
 0x63c   :  { %1249 = vrot.lane.b32.xlu1 %v3043_v28, %s2695_s22 }
 0x63d   :  { %1251 = vrot.lane.b32.xlu0 %v3049_v29, %s2695_s22 }
 0x640   :  { %1264 = vperm.xlu1 %2465, %v2538_v30  }
 0x641   :  { %1269 = vperm.xlu0 %2464, %v2539_v31  }
 0x644   :  { %1274 = vperm.xlu1 %2465, %v2540_v33  }
 0x67e   :  { %v855_v46 = vpop.permute.xlu1 %854 }
 0x67f   :  { %v857_v47 = vpop.permute.xlu0 %856 }
 0x680   :  { %942 = vmatprep.subr.bf16.mxu0 %v857_v47  ;;  %v862_v48 = vsel %vm117_vm0, %v855_v46, %v857_v47 }
 0x681   :  { %943 = vmatpush1.bf16.msra.mxu0 %v862_v48 }
 0x686   :  { %v859_v49 = vpop.permute.xlu1 %858 }
 0x687   :  { %v861_v50 = vpop.permute.xlu0 %860 }
 0x688   :  { %944 = vmatprep.subr.bf16.mxu0 %v861_v50  ;;  %v863_v51 = vsel %vm117_vm0, %v859_v49, %v861_v50 }
 0x689   :  { %945 = vmatpush1.bf16.msra.mxu0 %v863_v51 }
 0x68a   :  { %v869_v52 = vpop.permute.xlu1 %868 }
 0x68b   :  { %v871_v53 = vpop.permute.xlu0 %870 }
 0x68c   :  { %946 = vmatprep.subr.bf16.mxu0 %v871_v53  ;;  %v876_v54 = vsel %vm125_vm1, %v869_v52, %v871_v53 }
 0x68d   :  { %947 = vmatpush1.bf16.msra.mxu0 %v876_v54 }
 0x68e   :  { %v873_v55 = vpop.permute.xlu1 %872 }
 0x68f   :  { %v875_v56 = vpop.permute.xlu0 %874 }
 0x690   :  { %948 = vmatprep.subr.bf16.mxu0 %v875_v56  ;;  %v877_v57 = vsel %vm125_vm1, %v873_v55, %v875_v56 }
 0x691   :  { %949 = vmatpush1.bf16.msra.mxu0 %v877_v57 }
 0x692   :  { %v883_v58 = vpop.permute.xlu1 %882 }
 0x693   :  { %v885_v59 = vpop.permute.xlu0 %884 }
 0x694   :  { %950 = vmatprep.subr.bf16.mxu0 %v885_v59  ;;  %v890_v60 = vsel %vm133_vm2, %v883_v58, %v885_v59 }
 0x695   :  { %951 = vmatpush1.bf16.msra.mxu0 %v890_v60 }
 0x696   :  { %v887_v61 = vpop.permute.xlu1 %886 }
 0x697   :  { %v889_v62 = vpop.permute.xlu0 %888 }
 0x698   :  { %952 = vmatprep.subr.bf16.mxu0 %v889_v62  ;;  %v891_v63 = vsel %vm133_vm2, %v887_v61, %v889_v62 }
 0x699   :  { %953 = vmatpush1.bf16.msra.mxu0 %v891_v63 }
 0x69a   :  { %v897_v0 = vpop.permute.xlu1 %896 }
 0x69b   :  { %v899_v1 = vpop.permute.xlu0 %898 }
 0x69c   :  { %v904_v3 = vsel %vm141_vm3, %v897_v0, %v899_v1  ;;  %954 = vmatprep.subr.bf16.mxu0 %v899_v1 }
 0x69d   :  { %955 = vmatpush1.bf16.msra.mxu0 %v904_v3 }
 0x69e   :  { %v901_v4 = vpop.permute.xlu1 %900 }
 0x69f   :  { %v903_v5 = vpop.permute.xlu0 %902 }
 0x6a0   :  { %v905_v6 = vsel %vm141_vm3, %v901_v4, %v903_v5  ;;  %956 = vmatprep.subr.bf16.mxu0 %v903_v5 }
 0x6a1   :  { %957 = vmatpush1.bf16.msra.mxu0 %v905_v6 }
 0x6a2   :  { %1291 = vmatprep.subr.bf16.mxu0 %v3049_v29  ;;  %v1229_v9 = vpop.permute.xlu1 %1228 }
 0x6a3   :  { %v1231_v10 = vpop.permute.xlu0 %1230 }
 0x6a4   :  { %971 = vmatmul.mubr.bf16.vlgmr.msra.gmra.mrb[8].mxu0 %v2484_v7  ;;  %v1232_v11 = vsel %vm117_vm0, %v1229_v9, %v1231_v10 }
 0x6a5   :  { %1292 = vmatpush1.bf16.msra.mxu0 %v3043_v28  ;;  %2382 = vmatprep.mubr.msk.bf16.mxu0 %vm762_vm7, %v2487_v8 }
 0x6a6   :  { %1293 = vmatprep.subr.bf16.mxu0 %v1231_v10  ;;  %v1236_v12 = vpop.permute.xlu1 %1235 }
 0x6a7   :  { %v1238_v13 = vpop.permute.xlu0 %1237 }
 0x6a8   :  { %v1239_v15 = vsel %vm125_vm1, %v1236_v12, %v1238_v13 }
 0x6a9   :  { %1294 = vmatpush1.bf16.msra.mxu0 %v1232_v11 }
 0x6aa   :  { %1295 = vmatprep.subr.bf16.mxu0 %v1238_v13  ;;  %v1243_v16 = vpop.permute.xlu1 %1242 }
 0x6ab   :  { %v1245_v17 = vpop.permute.xlu0 %1244 }
 0x6ac   :  { %981 = vmatmul.mubr.bf16.gmra.mrb[12].mxu0 %v2489_v14  ;;  %v1246_v18 = vsel %vm133_vm2, %v1243_v16, %v1245_v17  ;;  %v1442_v16 = vld [vmem:[%s3455_s4 + $0x8] sm:$0xff] }
 0x6ad   :  { %1296 = vmatpush1.bf16.msra.mxu0 %v1239_v15  ;;  %1323 = vmatprep.mubr.bf16.mxu0 %v2693_v2  ;;  %v1441_v15 = vld [vmem:[%s3455_s4] sm:$0xff] }
 0x6ae   :  { %1297 = vmatprep.subr.bf16.mxu0 %v1245_v17  ;;  %v1250_v19 = vpop.permute.xlu1 %1249  ;;  %v1443_v17 = vld [vmem:[%s3455_s4 + $0x10] sm:$0xff] }
 0x6af   :  { %v1252_v20 = vpop.permute.xlu0 %1251 }
 0x6b0   :  { %v1253_v21 = vsel %vm141_vm3, %v1250_v19, %v1252_v20 }
 0x6b1   :  { %1298 = vmatpush1.bf16.msra.mxu0 %v1246_v18 }
 0x6b2   :  { %1299 = vmatprep.subr.bf16.mxu0 %v1252_v20 }
 0x6b5   :  { %1300 = vmatpush1.bf16.msra.mxu0 %v1253_v21 }
 0x6b8   :  { %2406 = vmatmul.mubr.msk.bf16.vlgmr.msra.gmra.mrb[16].mxu0 %vm174_vm4, %v2490_v22 }
 0x6b9   :  { %1333 = vmatprep.mubr.bf16.mxu0 %v2693_v2 }
 0x6bf   :  { %v1265_v39 = vpop.permute.xlu1 %1264 }
 0x6c0   :  { %2407 = vmatmul.mubr.msk.bf16.gmra.mrb[20].mxu0 %vm174_vm4, %v2491_v23  ;;  %vm1138_vm4 = vcmask 883712   ;;  %v1270_v43 = vpop.permute.xlu0 %1269 }
 0x6c1   :  { %1511 = vmatprep.mubr.bf16.mxu0 %v2693_v2 }
 0x6c3   :  { %v1275_v55 = vpop.permute.xlu1 %1274 }
 0x777   :  { %v972_v27 = vpop.f32.mrb[8].mxu0 }
 0x778   :  { %v974_v28 = vpop.f32.mrb[9].mxu0 }
 0x779   :  { %v976_v29 = vpop.f32.mrb[10].mxu0 }
 0x77a   :  { %v991_v30 = vpack.c.bf16 %v976_v29, %v972_v27  ;;  %v978_v31 = vpop.f32.mrb[11].mxu0 }
 0x77b   :  { %v992_v32 = vpack.c.bf16 %v978_v31, %v974_v28 }
 0x77d   :  { %2398 = vmatprep.mubr.msk.bf16.mxu1 %vm1138_vm4, %v992_v32 }
 0x77e   :  { %1182 = vmatmul.mubr.bf16.vlgmr.msra.gmra.mrb[24].mxu1 %v991_v30 }
 0x77f   :  { %v982_v33 = vpop.f32.mrb[12].mxu0 }
 0x780   :  { %v984_v34 = vpop.f32.mrb[13].mxu0 }
 0x781   :  { %v986_v35 = vpop.f32.mrb[14].mxu0 }
 0x782   :  { %v993_v36 = vpack.c.bf16 %v986_v35, %v982_v33  ;;  %v988_v37 = vpop.f32.mrb[15].mxu0 }
 0x783   :  { %v994_v38 = vpack.c.bf16 %v988_v37, %v984_v34 }
 0x785   :  { %2399 = vmatprep.mubr.msk.bf16.mxu1 %vm1138_vm4, %v994_v38 }
 0x786   :  { %1190 = vmatmul.mubr.bf16.gmra.mrb[28].mxu1 %v993_v36 }
 0x787   :  { %1715 = vmatprep.mubr.bf16.mxu1 %v2693_v2 }
 0x78b   :  { %v1325_v40 = vpop.f32.mrb[16].mxu0 }
 0x78c   :  { %v1326_v41 = vadd.f32 %v1325_v40, %v1265_v39  ;;  %v1327_v42 = vpop.f32.mrb[17].mxu0 }
 0x78d   :  { %v1328_v44 = vadd.f32 %v1327_v42, %v1265_v39  ;;  %v1329_v45 = vpop.f32.mrb[18].mxu0 }
 0x78e   :  { %v1348_v46 = vmul.f32 0.01, %v1326_v41  ;;  %v1330_v47 = vadd.f32 %v1329_v45, %v1270_v43  ;;  %v1331_v48 = vpop.f32.mrb[19].mxu0  ;;  %vm1342_vm9 = vcmp.gt.f32.partialorder %v1326_v41, 0.0 }
 0x78f   :  { %v1349_v49 = vmul.f32 0.01, %v1328_v44  ;;  %v1332_v50 = vadd.f32 %v1331_v48, %v1270_v43  ;;  %vm1343_vm10 = vcmp.gt.f32.partialorder %v1328_v44, 0.0  ;;  %v2508_v48 = vld [vmem:[#allocation5 + $0x8] ss:$0 sps:$4 sm:$0xff]  }
 0x790   :  { %vm1344_vm13 = vcmp.gt.f32.partialorder %v1330_v47, 0.0  ;;  %v1350_v51 = vmul.f32 0.01, %v1330_v47  ;;  %v1354_v53 = vsel %vm1342_vm9, %v1326_v41, %v1348_v46 }
 0x791   :  { %vm1345_vm14 = vcmp.gt.f32.partialorder %v1332_v50, 0.0  ;;  %v1351_v52 = vmul.f32 0.01, %v1332_v50  ;;  %v1355_v56 = vsel %vm1343_vm10, %v1328_v44, %v1349_v49 }
 0x792   :  { %v1356_v54 = vsel %vm1344_vm13, %v1330_v47, %v1350_v51  ;;  %v2507_v47 = vld [vmem:[#allocation5] sm:$0xff]  }
 0x793   :  { %v1360_v57 = vpack.c.bf16 %v1356_v54, %v1354_v53  ;;  %v1357_v58 = vsel %vm1345_vm14, %v1332_v50, %v1351_v52  ;;  %v1335_v59 = vpop.f32.mrb[20].mxu0 }
 0x794   :  { %v1361_v60 = vpack.c.bf16 %v1357_v58, %v1355_v56  ;;  %v1336_v61 = vadd.f32 %v1335_v59, %v1275_v55  ;;  %v1337_v62 = vpop.f32.mrb[21].mxu0 }
 0x795   :  { %v1338_v63 = vadd.f32 %v1337_v62, %v1275_v55  ;;  %v1339_v0 = vpop.f32.mrb[22].mxu0  ;;  %1386 = vrot.lane.b32.xlu0 %v1360_v57, %s2691_s1  ;;  %v1368_v5 = vrot.slane %v1360_v57, 4 }
 0x796   :  { %vm1346_vm15 = vcmp.gt.f32.partialorder %v1336_v61, 0.0  ;;  %v1352_v1 = vmul.f32 0.01, %v1336_v61  ;;  %v1340_v3 = vpop.f32.mrb[23].mxu0  ;;  %1388 = vrot.lane.b32.xlu1 %v1361_v60, %s2691_s1  ;;  %1479 = vmatprep.subr.bf16.mxu0 %v1361_v60  ;;  %v1369_v7 = vrot.slane %v1361_v60, 4 }
 0x797   :  { %vm1347_vm5 = vcmp.gt.f32.partialorder %v1338_v63, 0.0  ;;  %v1353_v4 = vmul.f32 0.01, %v1338_v63  ;;  %1480 = vmatpush1.bf16.msra.mxu0 %v1360_v57 }
 0x798   :  { %v1358_v6 = vsel %vm1346_vm15, %v1336_v61, %v1352_v1 }
 0x799   :  { %v1362_v8 = vpack.c.bf16 %v1358_v6, %v1358_v6  ;;  %v1359_v9 = vsel %vm1347_vm5, %v1338_v63, %v1353_v4  ;;  %1374 = vrot.lane.b32.xlu0 %v1368_v5, %s2692_s28 }
 0x79a   :  { %v1363_v10 = vpack.c.bf16 %v1359_v9, %v1359_v9  ;;  %1376 = vrot.lane.b32.xlu1 %v1369_v7, %s2692_s28 }
 0x79b   :  { %v1370_v11 = vrot.slane %v1362_v8, 4 }
 0x79c   :  { %v1372_v12 = vrot.slane %v1363_v10, 4 }
 0x79d   :  { %v1371_v13 = vsel %vm258_vm11, %v1368_v5, %v1370_v11 }
 0x79e   :  { %1378 = vrot.lane.b32.xlu0 %v1371_v13, %s2692_s28  ;;  %v1373_v14 = vsel %vm258_vm11, %v1369_v7, %v1372_v12 }
 0x79f   :  { %1380 = vrot.lane.b32.xlu1 %v1373_v14, %s2692_s28 }
 0x7a2   :  { %1390 = vrot.lane.b32.xlu0 %v1362_v8, %s2691_s1 }
 0x7a3   :  { %1392 = vrot.lane.b32.xlu1 %v1363_v10, %s2691_s1 }
 0x7a6   :  { %1398 = vrot.lane.b32.xlu0 %v1368_v5, %s2694_s9 }
 0x7a7   :  { %1400 = vrot.lane.b32.xlu1 %v1369_v7, %s2694_s9 }
 0x7aa   :  { %1402 = vrot.lane.b32.xlu0 %v1371_v13, %s2694_s9 }
 0x7ab   :  { %1404 = vrot.lane.b32.xlu1 %v1373_v14, %s2694_s9 }
 0x7ae   :  { %1410 = vrot.lane.b32.xlu0 %v1360_v57, %s2695_s22 }
 0x7af   :  { %1412 = vrot.lane.b32.xlu1 %v1361_v60, %s2695_s22 }
 0x7b2   :  { %1414 = vrot.lane.b32.xlu0 %v1362_v8, %s2695_s22 }
 0x7b3   :  { %1416 = vrot.lane.b32.xlu1 %v1363_v10, %s2695_s22 }
 0x7b6   :  { %1446 = vperm.xlu0 %2464, %v1441_v15  }
 0x7b7   :  { %1451 = vperm.xlu1 %2465, %v1442_v16  }
 0x7ba   :  { %1456 = vperm.xlu0 %2464, %v1443_v17  }
 0x807   :  { %v1387_v18 = vpop.permute.xlu0 %1386 }
 0x808   :  { %v1389_v19 = vpop.permute.xlu1 %1388 }
 0x809   :  { %v1394_v30 = vsel %vm125_vm1, %v1387_v18, %v1389_v19 }
 0x80b   :  { %v1375_v20 = vpop.permute.xlu0 %1374 }
 0x80c   :  { %v1377_v21 = vpop.permute.xlu1 %1376 }
 0x80d   :  { %v1382_v22 = vsel %vm117_vm0, %v1375_v20, %v1377_v21  ;;  %v1428_v23 = vsel %vm258_vm11, %v1363_v10, %v1377_v21 }
 0x80e   :  { %1481 = vmatprep.subr.bf16.mxu0 %v1428_v23  ;;  %v1424_v24 = vsel %vm258_vm11, %v1362_v8, %v1382_v22 }
 0x80f   :  { %1482 = vmatpush1.bf16.msra.mxu0 %v1424_v24 }
 0x810   :  { %v1379_v25 = vpop.permute.xlu0 %1378 }
 0x811   :  { %v1381_v26 = vpop.permute.xlu1 %1380 }
 0x812   :  { %v1383_v27 = vsel %vm117_vm0, %v1379_v25, %v1381_v26  ;;  %1483 = vmatprep.subr.bf16.mxu0 %v1381_v26 }
 0x813   :  { %1484 = vmatpush1.bf16.msra.mxu0 %v1383_v27 }
 0x814   :  { %1485 = vmatprep.subr.bf16.mxu0 %v1389_v19  ;;  %v1391_v28 = vpop.permute.xlu0 %1390 }
 0x815   :  { %v1393_v29 = vpop.permute.xlu1 %1392 }
 0x816   :  { %v1395_v33 = vsel %vm125_vm1, %v1391_v28, %v1393_v29 }
 0x817   :  { %1486 = vmatpush1.bf16.msra.mxu0 %v1394_v30 }
 0x818   :  { %v1399_v31 = vpop.permute.xlu0 %1398 }
 0x819   :  { %v1401_v32 = vpop.permute.xlu1 %1400 }
 0x81a   :  { %v1406_v34 = vsel %vm133_vm2, %v1399_v31, %v1401_v32  ;;  %v1436_v35 = vsel %vm258_vm11, %v1393_v29, %v1401_v32 }
 0x81b   :  { %1487 = vmatprep.subr.bf16.mxu0 %v1436_v35  ;;  %v1432_v36 = vsel %vm258_vm11, %v1395_v33, %v1406_v34  ;;  %v1637_v33 = vld [vmem:[%s3457_s6] sm:$0xff]  ;;  %v1638_v34 = vld [vmem:[%s3457_s6 + $0x8] sm:$0xff]  ;;  %v1639_v35 = vld [vmem:[%s3457_s6 + $0x10] sm:$0xff] }
 0x81c   :  { %1488 = vmatpush1.bf16.msra.mxu0 %v1432_v36  ;;  %v1403_v37 = vpop.permute.xlu0 %1402  ;;  %v1640_v36 = vld [vmem:[%s3457_s6 + $0x18] sm:$0xff] }
 0x81d   :  { %v1405_v38 = vpop.permute.xlu1 %1404 }
 0x81e   :  { %v1407_v39 = vsel %vm133_vm2, %v1403_v37, %v1405_v38  ;;  %1489 = vmatprep.subr.bf16.mxu0 %v1405_v38 }
 0x820   :  { %1490 = vmatpush1.bf16.msra.mxu0 %v1407_v39  ;;  %v1411_v40 = vpop.permute.xlu0 %1410 }
 0x821   :  { %v1413_v41 = vpop.permute.xlu1 %1412 }
 0x822   :  { %v1418_v42 = vsel %vm141_vm3, %v1411_v40, %v1413_v41  ;;  %1491 = vmatprep.subr.bf16.mxu0 %v1413_v41 }
 0x824   :  { %1492 = vmatpush1.bf16.msra.mxu0 %v1418_v42  ;;  %v1415_v43 = vpop.permute.xlu0 %1414 }
 0x825   :  { %v1417_v44 = vpop.permute.xlu1 %1416 }
 0x826   :  { %v1419_v45 = vsel %vm141_vm3, %v1415_v43, %v1417_v44  ;;  %2410 = vmatprep.subr.msk.bf16.mxu0 %vm258_vm11, %v1417_v44 }
 0x827   :  { %v1474_v46 = vsel %vm258_vm11, %v1419_v45, 0 }
 0x828   :  { %1494 = vmatpush1.bf16.msra.mxu0 %v1474_v46 }
 0x82b   :  { %2411 = vmatmul.mubr.msk.bf16.vlgmr.msra.gmra.mrb[24].mxu0 %vm359_vm12, %v2507_v47 }
 0x82c   :  { %1521 = vmatprep.mubr.bf16.mxu0 %v2693_v2 }
 0x833   :  { %2412 = vmatmul.mubr.msk.bf16.gmra.mrb[28].mxu0 %vm359_vm12, %v2508_v48 }
 0x835   :  { %v1447_v57 = vpop.permute.xlu0 %1446 }
 0x836   :  { %v1452_v61 = vpop.permute.xlu1 %1451 }
 0x839   :  { %v1457_v11 = vpop.permute.xlu0 %1456 }
 0x851   :  { %v3203_v49 = vpop.f32.mrb[24].mxu1 }
 0x852   :  { %v1185_v50 = vpop.f32.mrb[25].mxu1 }
 0x853   :  { %v3205_v51 = vpop.f32.mrb[26].mxu1 }
 0x854   :  { %v1188_v52 = vpop.f32.mrb[27].mxu1 }
 0x859   :  { %v3207_v53 = vpop.f32.mrb[28].mxu1 }
 0x85a   :  { %v1193_v54 = vpop.f32.mrb[29].mxu1 }
 0x85b   :  { %v3209_v55 = vpop.f32.mrb[30].mxu1 }
 0x85c   :  { %v1196_v56 = vpop.f32.mrb[31].mxu1 }
 0x8fe   :  { %v1513_v58 = vpop.f32.mrb[24].mxu0 }
 0x8ff   :  { %v1514_v59 = vadd.f32 %v1513_v58, %v1447_v57  ;;  %v1515_v60 = vpop.f32.mrb[25].mxu0 }
 0x900   :  { %v1516_v62 = vadd.f32 %v1515_v60, %v1447_v57  ;;  %v1517_v63 = vpop.f32.mrb[26].mxu0 }
 0x901   :  { %vm1530_vm6 = vcmp.gt.f32.partialorder %v1514_v59, 0.0  ;;  %v1536_v0 = vmul.f32 0.01, %v1514_v59  ;;  %v1518_v1 = vadd.f32 %v1517_v63, %v1452_v61  ;;  %v1519_v3 = vpop.f32.mrb[27].mxu0 }
 0x902   :  { %vm1531_vm9 = vcmp.gt.f32.partialorder %v1516_v62, 0.0  ;;  %v1537_v4 = vmul.f32 0.01, %v1516_v62  ;;  %v1520_v5 = vadd.f32 %v1519_v3, %v1452_v61 }
 0x903   :  { %v1542_v6 = vsel %vm1530_vm6, %v1514_v59, %v1536_v0  ;;  %vm1532_vm10 = vcmp.gt.f32.partialorder %v1518_v1, 0.0  ;;  %v1538_v7 = vmul.f32 0.01, %v1518_v1 }
 0x904   :  { %1549 = vst [vmem:[#allocation10 + $0x30] sm:$0xff] %v1542_v6  ;;  %v1543_v8 = vsel %vm1531_vm9, %v1516_v62, %v1537_v4  ;;  %vm1533_vm13 = vcmp.gt.f32.partialorder %v1520_v5, 0.0  ;;  %v1539_v9 = vmul.f32 0.01, %v1520_v5 }
 0x905   :  { %1550 = vst.msk [vmem:[#allocation10 + $0x38] sm:$0xff] %vm359_vm12, %v1543_v8  ;;  %v1544_v10 = vsel %vm1532_vm10, %v1518_v1, %v1538_v7  ;;  %v2509_v7 = vld [vmem:[#allocation7] sm:$0xff]  }
 0x906   :  { %1551 = vst [vmem:[#allocation10 + $0x40] sm:$0xff] %v1544_v10  ;;  %v1555_v12 = vpack.c.bf16 %v1544_v10, %v1542_v6  ;;  %v1545_v13 = vsel %vm1533_vm13, %v1520_v5, %v1539_v9  ;;  %v1523_v14 = vpop.f32.mrb[28].mxu0 }
 0x907   :  { %1552 = vst.msk [vmem:[#allocation10 + $0x48] sm:$0xff] %vm359_vm12, %v1545_v13  ;;  %v1556_v15 = vpack.c.bf16 %v1545_v13, %v1543_v8  ;;  %v1524_v16 = vadd.f32 %v1523_v14, %v1457_v11  ;;  %v1525_v17 = vpop.f32.mrb[29].mxu0  ;;  %v2510_v8 = vld [vmem:[#allocation7 + $0x8] sm:$0xff]  }
 0x908   :  { %v1526_v18 = vadd.f32 %v1525_v17, %v1457_v11  ;;  %v1527_v19 = vpop.f32.mrb[30].mxu0  ;;  %1581 = vrot.lane.b32.xlu1 %v1555_v12, %s2691_s1  ;;  %v1563_v23 = vrot.slane %v1555_v12, 4 }
 0x909   :  { %vm1534_vm14 = vcmp.gt.f32.partialorder %v1524_v16, 0.0  ;;  %v1540_v20 = vmul.f32 0.01, %v1524_v16  ;;  %v1528_v21 = vpop.f32.mrb[31].mxu0  ;;  %1583 = vrot.lane.b32.xlu0 %v1556_v15, %s2691_s1  ;;  %1683 = vmatprep.subr.bf16.mxu1 %v1556_v15  ;;  %v1564_v25 = vrot.slane %v1556_v15, 4 }
 0x90a   :  { %vm1535_vm15 = vcmp.gt.f32.partialorder %v1526_v18, 0.0  ;;  %v1541_v22 = vmul.f32 0.01, %v1526_v18  ;;  %1684 = vmatpush1.bf16.msra.mxu1 %v1555_v12 }
 0x90b   :  { %v1546_v24 = vsel %vm1534_vm14, %v1524_v16, %v1540_v20 }
 0x90c   :  { %1553 = vst [vmem:[#allocation10 + $0x50] sm:$0xff] %v1546_v24  ;;  %v1557_v26 = vpack.c.bf16 %v1546_v24, %v1546_v24  ;;  %v1547_v27 = vsel %vm1535_vm15, %v1526_v18, %v1541_v22  ;;  %1569 = vrot.lane.b32.xlu1 %v1563_v23, %s2692_s28 }
 0x90d   :  { %1554 = vst.msk [vmem:[#allocation10 + $0x58] sm:$0xff] %vm359_vm12, %v1547_v27  ;;  %v1558_v28 = vpack.c.bf16 %v1547_v27, %v1547_v27  ;;  %1571 = vrot.lane.b32.xlu0 %v1564_v25, %s2692_s28 }
 0x90e   :  { %v1565_v29 = vrot.slane %v1557_v26, 4 }
 0x90f   :  { %v1567_v30 = vrot.slane %v1558_v28, 4 }
 0x910   :  { %v1566_v31 = vsel %vm258_vm11, %v1563_v23, %v1565_v29 }
 0x911   :  { %1573 = vrot.lane.b32.xlu1 %v1566_v31, %s2692_s28  ;;  %v1568_v32 = vsel %vm258_vm11, %v1564_v25, %v1567_v30 }
 0x912   :  { %1575 = vrot.lane.b32.xlu0 %v1568_v32, %s2692_s28 }
 0x915   :  { %1585 = vrot.lane.b32.xlu1 %v1557_v26, %s2691_s1 }
 0x916   :  { %1587 = vrot.lane.b32.xlu0 %v1558_v28, %s2691_s1 }
 0x919   :  { %1593 = vrot.lane.b32.xlu1 %v1563_v23, %s2694_s9 }
 0x91a   :  { %1595 = vrot.lane.b32.xlu0 %v1564_v25, %s2694_s9 }
 0x91d   :  { %1597 = vrot.lane.b32.xlu1 %v1566_v31, %s2694_s9 }
 0x91e   :  { %1599 = vrot.lane.b32.xlu0 %v1568_v32, %s2694_s9 }
 0x921   :  { %1605 = vrot.lane.b32.xlu1 %v1555_v12, %s2695_s22 }
 0x922   :  { %1607 = vrot.lane.b32.xlu0 %v1556_v15, %s2695_s22 }
 0x925   :  { %1609 = vrot.lane.b32.xlu1 %v1557_v26, %s2695_s22 }
 0x926   :  { %1611 = vrot.lane.b32.xlu0 %v1558_v28, %s2695_s22 }
 0x929   :  { %1643 = vperm.xlu1 %2465, %v1637_v33  }
 0x92a   :  { %1648 = vperm.xlu0 %2464, %v1638_v34  }
 0x92d   :  { %1653 = vperm.xlu1 %2465, %v1639_v35  }
 0x92e   :  { %1658 = vperm.xlu0 %2464, %v1640_v36  }
 0x97a   :  { %v1582_v37 = vpop.permute.xlu1 %1581 }
 0x97b   :  { %v1584_v38 = vpop.permute.xlu0 %1583 }
 0x97c   :  { %v1589_v50 = vsel %vm125_vm1, %v1582_v37, %v1584_v38 }
 0x97e   :  { %v1570_v39 = vpop.permute.xlu1 %1569 }
 0x97f   :  { %v1572_v40 = vpop.permute.xlu0 %1571 }
 0x980   :  { %v1577_v41 = vsel %vm117_vm0, %v1570_v39, %v1572_v40  ;;  %v1623_v42 = vsel %vm258_vm11, %v1558_v28, %v1572_v40 }
 0x981   :  { %1685 = vmatprep.subr.bf16.mxu1 %v1623_v42  ;;  %v1619_v43 = vsel %vm258_vm11, %v1557_v26, %v1577_v41 }
 0x982   :  { %1686 = vmatpush1.bf16.msra.mxu1 %v1619_v43 }
 0x983   :  { %v1574_v44 = vpop.permute.xlu1 %1573 }
 0x984   :  { %v1576_v45 = vpop.permute.xlu0 %1575 }
 0x985   :  { %v1578_v46 = vsel %vm117_vm0, %v1574_v44, %v1576_v45  ;;  %1687 = vmatprep.subr.bf16.mxu1 %v1576_v45 }
 0x986   :  { %1688 = vmatpush1.bf16.msra.mxu1 %v1578_v46 }
 0x987   :  { %v1586_v47 = vpop.permute.xlu1 %1585  ;;  %1689 = vmatprep.subr.bf16.mxu1 %v1584_v38 }
 0x988   :  { %v1588_v48 = vpop.permute.xlu0 %1587 }
 0x989   :  { %v1590_v56 = vsel %vm125_vm1, %v1586_v47, %v1588_v48 }
 0x98a   :  { %1690 = vmatpush1.bf16.msra.mxu1 %v1589_v50  ;;  %v2513_v50 = vld [vmem:[%s3458_s7 + $0x4] ss:$8 sps:$4 sm:$0xff]  }
 0x98b   :  { %v1594_v52 = vpop.permute.xlu1 %1593  ;;  %2422 = vmatprep.mubr.msk.bf16.mxu0 %vm762_vm7, %v2513_v50 }
 0x98c   :  { %v1596_v54 = vpop.permute.xlu0 %1595 }
 0x98d   :  { %v1601_v57 = vsel %vm133_vm2, %v1594_v52, %v1596_v54  ;;  %v1631_v58 = vsel %vm258_vm11, %v1588_v48, %v1596_v54  ;;  %v1828_v52 = vld [vmem:[%s3459_s8] sm:$0xff]  ;;  %v1829_v54 = vld [vmem:[%s3459_s8 + $0x8] sm:$0xff] }
 0x98e   :  { %1691 = vmatprep.subr.bf16.mxu1 %v1631_v58  ;;  %v1627_v59 = vsel %vm258_vm11, %v1590_v56, %v1601_v57  ;;  %v1830_v56 = vld [vmem:[%s3459_s8 + $0x10] sm:$0xff]  ;;  %v1831_v57 = vld [vmem:[%s3459_s8 + $0x18] sm:$0xff] }
 0x98f   :  { %v1598_v60 = vpop.permute.xlu1 %1597  ;;  %1692 = vmatpush1.bf16.msra.mxu1 %v1627_v59 }
 0x990   :  { %v1600_v61 = vpop.permute.xlu0 %1599 }
 0x991   :  { %v1602_v62 = vsel %vm133_vm2, %v1598_v60, %v1600_v61  ;;  %1693 = vmatprep.subr.bf16.mxu1 %v1600_v61 }
 0x993   :  { %v1606_v63 = vpop.permute.xlu1 %1605  ;;  %1694 = vmatpush1.bf16.msra.mxu1 %v1602_v62 }
 0x994   :  { %v1608_v0 = vpop.permute.xlu0 %1607 }
 0x995   :  { %v1613_v1 = vsel %vm141_vm3, %v1606_v63, %v1608_v0  ;;  %1695 = vmatprep.subr.bf16.mxu1 %v1608_v0 }
 0x997   :  { %v1610_v3 = vpop.permute.xlu1 %1609  ;;  %1696 = vmatpush1.bf16.msra.mxu1 %v1613_v1 }
 0x998   :  { %v1612_v4 = vpop.permute.xlu0 %1611 }
 0x999   :  { %v1614_v5 = vsel %vm141_vm3, %v1610_v3, %v1612_v4  ;;  %2415 = vmatprep.subr.msk.bf16.mxu1 %vm258_vm11, %v1612_v4 }
 0x99a   :  { %v1678_v6 = vsel %vm258_vm11, %v1614_v5, 0 }
 0x99b   :  { %1698 = vmatpush1.bf16.msra.mxu1 %v1678_v6 }
 0x99e   :  { %2416 = vmatmul.mubr.msk.bf16.vlgmr.msra.gmra.mrb[32].mxu1 %vm359_vm12, %v2509_v7 }
 0x99f   :  { %1725 = vmatprep.mubr.bf16.mxu1 %v2693_v2 }
 0x9a6   :  { %2417 = vmatmul.mubr.msk.bf16.gmra.mrb[36].mxu1 %vm359_vm12, %v2510_v8 }
 0x9a8   :  { %v1644_v9 = vpop.permute.xlu1 %1643 }
 0x9a9   :  { %v1649_v13 = vpop.permute.xlu0 %1648 }
 0x9ac   :  { %v1654_v25 = vpop.permute.xlu1 %1653 }
 0x9ad   :  { %v1659_v33 = vpop.permute.xlu0 %1658 }
 0xa71   :  { %v1717_v10 = vpop.f32.mrb[32].mxu1 }
 0xa72   :  { %v1718_v11 = vadd.f32 %v1717_v10, %v1644_v9  ;;  %v1719_v12 = vpop.f32.mrb[33].mxu1 }
 0xa73   :  { %v1720_v14 = vadd.f32 %v1719_v12, %v1644_v9  ;;  %v1721_v15 = vpop.f32.mrb[34].mxu1 }
 0xa74   :  { %v1744_v16 = vmul.f32 0.01, %v1718_v11  ;;  %v1722_v17 = vadd.f32 %v1721_v15, %v1649_v13  ;;  %v1723_v18 = vpop.f32.mrb[35].mxu1  ;;  %vm1736_vm11 = vcmp.gt.f32.partialorder %v1718_v11, 0.0 }
 0xa75   :  { %v1745_v19 = vmul.f32 0.01, %v1720_v14  ;;  %v1724_v20 = vadd.f32 %v1723_v18, %v1649_v13  ;;  %vm1737_vm5 = vcmp.gt.f32.partialorder %v1720_v14, 0.0 }
 0xa76   :  { %vm1738_vm6 = vcmp.gt.f32.partialorder %v1722_v17, 0.0  ;;  %v1746_v21 = vmul.f32 0.01, %v1722_v17  ;;  %v1752_v23 = vsel %vm1736_vm11, %v1718_v11, %v1744_v16 }
 0xa77   :  { %vm1739_vm9 = vcmp.gt.f32.partialorder %v1724_v20, 0.0  ;;  %v1747_v22 = vmul.f32 0.01, %v1724_v20  ;;  %v1753_v26 = vsel %vm1737_vm5, %v1720_v14, %v1745_v19  ;;  %v2511_v19 = vld [vmem:[%s3458_s7] ss:$8 sps:$4 sm:$0xff]  }
 0xa78   :  { %v1754_v24 = vsel %vm1738_vm6, %v1722_v17, %v1746_v21  ;;  %v2516_v21 = vld [vmem:[%s3458_s7 + $0x10] ss:$8 sps:$4 sm:$0xff]  }
 0xa79   :  { %v1760_v27 = vpack.c.bf16 %v1754_v24, %v1752_v23  ;;  %v1755_v28 = vsel %vm1739_vm9, %v1724_v20, %v1747_v22  ;;  %v1727_v29 = vpop.f32.mrb[36].mxu1  ;;  %v2514_v20 = vld [vmem:[%s3458_s7 + $0x14] ss:$8 sps:$4 sm:$0xff]  }
 0xa7a   :  { %v1761_v30 = vpack.c.bf16 %v1755_v28, %v1753_v26  ;;  %v1728_v31 = vadd.f32 %v1727_v29, %v1654_v25  ;;  %v1729_v32 = vpop.f32.mrb[37].mxu1 }
 0xa7b   :  { %v1730_v34 = vadd.f32 %v1729_v32, %v1654_v25  ;;  %v1731_v35 = vpop.f32.mrb[38].mxu1  ;;  %1768 = vrot.lane.b32.xlu1 %v1760_v27, %s2692_s28 }
 0xa7c   :  { %v1748_v36 = vmul.f32 0.01, %v1728_v31  ;;  %v1732_v37 = vadd.f32 %v1731_v35, %v1659_v33  ;;  %v1733_v38 = vpop.f32.mrb[39].mxu1  ;;  %1770 = vrot.lane.b32.xlu0 %v1761_v30, %s2692_s28  ;;  %1876 = vmatprep.subr.bf16.mxu0 %v1761_v30  ;;  %vm1740_vm12 = vcmp.gt.f32.partialorder %v1728_v31, 0.0 }
 0xa7d   :  { %v1749_v39 = vmul.f32 0.01, %v1730_v34  ;;  %v1734_v40 = vadd.f32 %v1733_v38, %v1659_v33  ;;  %1877 = vmatpush1.bf16.msra.mxu0 %v1760_v27  ;;  %vm1741_vm10 = vcmp.gt.f32.partialorder %v1730_v34, 0.0 }
 0xa7e   :  { %vm1742_vm13 = vcmp.gt.f32.partialorder %v1732_v37, 0.0  ;;  %v1750_v41 = vmul.f32 0.01, %v1732_v37  ;;  %v1756_v43 = vsel %vm1740_vm12, %v1728_v31, %v1748_v36 }
 0xa7f   :  { %vm1743_vm14 = vcmp.gt.f32.partialorder %v1734_v40, 0.0  ;;  %v1751_v42 = vmul.f32 0.01, %v1734_v40  ;;  %v1757_v45 = vsel %vm1741_vm10, %v1730_v34, %v1749_v39 }
 0xa80   :  { %v1758_v44 = vsel %vm1742_vm13, %v1732_v37, %v1750_v41 }
 0xa81   :  { %v1762_v46 = vpack.c.bf16 %v1758_v44, %v1756_v43  ;;  %v1759_v47 = vsel %vm1743_vm14, %v1734_v40, %v1751_v42 }
 0xa82   :  { %v1763_v48 = vpack.c.bf16 %v1759_v47, %v1757_v45 }
 0xa83   :  { %1772 = vrot.lane.b32.xlu1 %v1762_v46, %s2692_s28 }
 0xa84   :  { %1774 = vrot.lane.b32.xlu0 %v1763_v48, %s2692_s28  ;;  %1878 = vmatprep.subr.bf16.mxu0 %v1763_v48 }
 0xa85   :  { %1879 = vmatpush1.bf16.msra.mxu0 %v1762_v46 }
 0xa87   :  { %1782 = vrot.lane.b32.xlu1 %v1760_v27, %s2691_s1 }
 0xa88   :  { %1784 = vrot.lane.b32.xlu0 %v1761_v30, %s2691_s1 }
 0xa8b   :  { %1786 = vrot.lane.b32.xlu1 %v1762_v46, %s2691_s1 }
 0xa8c   :  { %1788 = vrot.lane.b32.xlu0 %v1763_v48, %s2691_s1 }
 0xa8f   :  { %1796 = vrot.lane.b32.xlu1 %v1760_v27, %s2694_s9 }
 0xa90   :  { %1798 = vrot.lane.b32.xlu0 %v1761_v30, %s2694_s9 }
 0xa93   :  { %1800 = vrot.lane.b32.xlu1 %v1762_v46, %s2694_s9 }
 0xa94   :  { %1802 = vrot.lane.b32.xlu0 %v1763_v48, %s2694_s9 }
 0xa97   :  { %1810 = vrot.lane.b32.xlu1 %v1760_v27, %s2695_s22 }
 0xa98   :  { %1812 = vrot.lane.b32.xlu0 %v1761_v30, %s2695_s22 }
 0xa9b   :  { %1814 = vrot.lane.b32.xlu1 %v1762_v46, %s2695_s22 }
 0xa9c   :  { %1816 = vrot.lane.b32.xlu0 %v1763_v48, %s2695_s22 }
 0xa9f   :  { %1834 = vperm.xlu1 %2465, %v1828_v52  }
 0xaa0   :  { %1839 = vperm.xlu0 %2464, %v1829_v54  }
 0xaa3   :  { %1844 = vperm.xlu1 %2465, %v1830_v56  }
 0xaa4   :  { %1849 = vperm.xlu0 %2464, %v1831_v57  }
 0xaed   :  { %v1769_v58 = vpop.permute.xlu1 %1768 }
 0xaee   :  { %v1771_v59 = vpop.permute.xlu0 %1770 }
 0xaef   :  { %v1776_v60 = vsel %vm117_vm0, %v1769_v58, %v1771_v59  ;;  %1880 = vmatprep.subr.bf16.mxu0 %v1771_v59 }
 0xaf0   :  { %1881 = vmatpush1.bf16.msra.mxu0 %v1776_v60 }
 0xaf5   :  { %v1773_v61 = vpop.permute.xlu1 %1772 }
 0xaf6   :  { %v1775_v62 = vpop.permute.xlu0 %1774 }
 0xaf7   :  { %v1777_v63 = vsel %vm117_vm0, %v1773_v61, %v1775_v62  ;;  %1882 = vmatprep.subr.bf16.mxu0 %v1775_v62 }
 0xaf8   :  { %1883 = vmatpush1.bf16.msra.mxu0 %v1777_v63 }
 0xaf9   :  { %v1783_v0 = vpop.permute.xlu1 %1782 }
 0xafa   :  { %v1785_v1 = vpop.permute.xlu0 %1784 }
 0xafb   :  { %v1790_v3 = vsel %vm125_vm1, %v1783_v0, %v1785_v1  ;;  %1884 = vmatprep.subr.bf16.mxu0 %v1785_v1 }
 0xafc   :  { %1885 = vmatpush1.bf16.msra.mxu0 %v1790_v3  ;;  %v2519_v3 = vld [vmem:[#allocation8 + $0x4] ss:$8 sps:$4 sm:$0xff]  }
 0xafd   :  { %v1787_v4 = vpop.permute.xlu1 %1786  ;;  %2428 = vmatprep.mubr.msk.bf16.mxu1 %vm762_vm7, %v2519_v3 }
 0xafe   :  { %v1789_v5 = vpop.permute.xlu0 %1788 }
 0xaff   :  { %v1791_v6 = vsel %vm125_vm1, %v1787_v4, %v1789_v5  ;;  %1886 = vmatprep.subr.bf16.mxu0 %v1789_v5  ;;  %v1025_v4 = vld [vmem:[%s3461_s10] sm:$0xff]  ;;  %v1026_v5 = vld [vmem:[%s3461_s10 + $0x8] sm:$0xff] }
 0xb00   :  { %1887 = vmatpush1.bf16.msra.mxu0 %v1791_v6  ;;  %v1027_v6 = vld [vmem:[%s3461_s10 + $0x10] sm:$0xff] }
 0xb01   :  { %v1797_v7 = vpop.permute.xlu1 %1796 }
 0xb02   :  { %v1799_v8 = vpop.permute.xlu0 %1798 }
 0xb03   :  { %v1804_v9 = vsel %vm133_vm2, %v1797_v7, %v1799_v8  ;;  %1888 = vmatprep.subr.bf16.mxu0 %v1799_v8  ;;  %v1028_v7 = vld [vmem:[%s3461_s10 + $0x18] sm:$0xff]  ;;  %v2523_v8 = vld [vmem:[%s3462_s11] sm:$0xff]  }
 0xb04   :  { %1889 = vmatpush1.bf16.msra.mxu0 %v1804_v9  ;;  %v2524_v9 = vld [vmem:[%s3462_s11 + $0x8] sm:$0xff]  }
 0xb05   :  { %v1801_v10 = vpop.permute.xlu1 %1800 }
 0xb06   :  { %v1803_v11 = vpop.permute.xlu0 %1802 }
 0xb07   :  { %v1805_v12 = vsel %vm133_vm2, %v1801_v10, %v1803_v11  ;;  %1890 = vmatprep.subr.bf16.mxu0 %v1803_v11  ;;  %v2525_v10 = vld [vmem:[%s3462_s11 + $0x10] sm:$0xff]   ;;  %v2526_v11 = vld [vmem:[%s3462_s11 + $0x18] sm:$0xff]  }
 0xb08   :  { %1891 = vmatpush1.bf16.msra.mxu0 %v1805_v12  ;;  %v2527_v12 = vld [vmem:[%s3462_s11 + $0x20] sm:$0xff]  }
 0xb09   :  { %v1811_v13 = vpop.permute.xlu1 %1810 }
 0xb0a   :  { %v1813_v14 = vpop.permute.xlu0 %1812 }
 0xb0b   :  { %v1818_v15 = vsel %vm141_vm3, %v1811_v13, %v1813_v14  ;;  %1892 = vmatprep.subr.bf16.mxu0 %v1813_v14  ;;  %v2528_v13 = vld [vmem:[%s3462_s11 + $0x28] sm:$0xff]   ;;  %v2529_v14 = vld [vmem:[%s3462_s11 + $0x30] sm:$0xff]  }
 0xb0c   :  { %1893 = vmatpush1.bf16.msra.mxu0 %v1818_v15  ;;  %v2530_v15 = vld [vmem:[%s3462_s11 + $0x38] sm:$0xff]  }
 0xb0d   :  { %v1815_v16 = vpop.permute.xlu1 %1814 }
 0xb0e   :  { %v1817_v17 = vpop.permute.xlu0 %1816 }
 0xb0f   :  { %v1819_v18 = vsel %vm141_vm3, %v1815_v16, %v1817_v17  ;;  %1894 = vmatprep.subr.bf16.mxu0 %v1817_v17  ;;  %v2531_v16 = vld [vmem:[%s3462_s11 + $0x40] sm:$0xff]   ;;  %v2532_v17 = vld [vmem:[%s3462_s11 + $0x48] sm:$0xff]  }
 0xb10   :  { %1895 = vmatpush1.bf16.msra.mxu0 %v1819_v18  ;;  %v2533_v18 = vld [vmem:[%s3462_s11 + $0x50] sm:$0xff]  }
 0xb11   :  { %2254 = vmatprep.subr.bf16.mxu0 %v2693_v2 }
 0xb13   :  { %1909 = vmatmul.mubr.bf16.vlgmr.msra.gmra.mrb[32].mxu0 %v2511_v19  ;;  %v2534_v19 = vld [vmem:[%s3462_s11 + $0x58] sm:$0xff]  }
 0xb14   :  { %2423 = vmatprep.mubr.msk.bf16.mxu0 %vm762_vm7, %v2514_v20  ;;  %2255 = vmatpush1.bf16.msra.mxu0 %v2523_v8  ;;  %v2535_v20 = vld [vmem:[%s3462_s11 + $0x60] sm:$0xff]  }
 0xb15   :  { %2256 = vmatprep.subr.bf16.mxu0 %v2693_v2 }
 0xb18   :  { %2257 = vmatpush1.bf16.msra.mxu0 %v2524_v9 }
 0xb19   :  { %2258 = vmatprep.subr.bf16.mxu0 %v2693_v2 }
 0xb1b   :  { %1919 = vmatmul.mubr.bf16.gmra.mrb[36].mxu0 %v2516_v21 }
 0xb1c   :  { %2259 = vmatpush1.bf16.msra.mxu0 %v2525_v10 }
 0xb1d   :  { %2260 = vmatprep.subr.bf16.mxu0 %v2693_v2 }
 0xb1e   :  { %v1835_v22 = vpop.permute.xlu1 %1834 }
 0xb1f   :  { %v1840_v26 = vpop.permute.xlu0 %1839 }
 0xb20   :  { %2261 = vmatpush1.bf16.msra.mxu0 %v2526_v11 }
 0xb21   :  { %2262 = vmatprep.subr.bf16.mxu0 %v2693_v2 }
 0xb22   :  { %v1845_v38 = vpop.permute.xlu1 %1844 }
 0xb23   :  { %v1850_v46 = vpop.permute.xlu0 %1849 }
 0xb24   :  { %2263 = vmatpush1.bf16.msra.mxu0 %v2527_v12 }
 0xb25   :  { %2264 = vmatprep.subr.bf16.mxu0 %v2693_v2 }
 0xb28   :  { %2265 = vmatpush1.bf16.msra.mxu0 %v2528_v13 }
 0xb29   :  { %2266 = vmatprep.subr.bf16.mxu0 %v2693_v2 }
 0xb2c   :  { %2267 = vmatpush1.bf16.msra.mxu0 %v2529_v14 }
 0xb2d   :  { %2268 = vmatprep.subr.bf16.mxu0 %v2693_v2 }
 0xb30   :  { %2269 = vmatpush1.bf16.msra.mxu0 %v2530_v15 }
 0xb31   :  { %2270 = vmatprep.subr.bf16.mxu0 %v2693_v2 }
 0xb34   :  { %2271 = vmatpush1.bf16.msra.mxu0 %v2531_v16 }
 0xb35   :  { %2272 = vmatprep.subr.bf16.mxu0 %v2693_v2 }
 0xb38   :  { %2273 = vmatpush1.bf16.msra.mxu0 %v2532_v17 }
 0xb39   :  { %2274 = vmatprep.subr.bf16.mxu0 %v2693_v2 }
 0xb3c   :  { %2275 = vmatpush1.bf16.msra.mxu0 %v2533_v18 }
 0xb3d   :  { %2276 = vmatprep.subr.bf16.mxu0 %v2693_v2 }
 0xb40   :  { %2277 = vmatpush1.bf16.msra.mxu0 %v2534_v19 }
 0xb41   :  { %2278 = vmatprep.subr.bf16.mxu0 %v2693_v2 }
 0xb44   :  { %2279 = vmatpush1.bf16.msra.mxu0 %v2535_v20 }
 0xb45   :  { %2280 = vmatprep.subr.bf16.mxu0 %v2693_v2 }
 0xbe6   :  { %v1910_v23 = vpop.f32.mrb[32].mxu0 }
 0xbe7   :  { %v1911_v24 = vadd.f32 %v1910_v23, %v1835_v22  ;;  %v1912_v25 = vpop.f32.mrb[33].mxu0 }
 0xbe8   :  { %v1913_v27 = vadd.f32 %v1912_v25, %v1835_v22  ;;  %v1914_v28 = vpop.f32.mrb[34].mxu0 }
 0xbe9   :  { %v1937_v29 = vmul.f32 0.01, %v1911_v24  ;;  %v1915_v30 = vadd.f32 %v1914_v28, %v1840_v26  ;;  %v1916_v31 = vpop.f32.mrb[35].mxu0  ;;  %vm1929_vm15 = vcmp.gt.f32.partialorder %v1911_v24, 0.0 }
 0xbea   :  { %v1938_v32 = vmul.f32 0.01, %v1913_v27  ;;  %v1917_v33 = vadd.f32 %v1916_v31, %v1840_v26  ;;  %vm1930_vm11 = vcmp.gt.f32.partialorder %v1913_v27, 0.0 }
 0xbeb   :  { %vm1931_vm5 = vcmp.gt.f32.partialorder %v1915_v30, 0.0  ;;  %v1939_v34 = vmul.f32 0.01, %v1915_v30  ;;  %v1945_v36 = vsel %vm1929_vm15, %v1911_v24, %v1937_v29 }
 0xbec   :  { %vm1932_vm6 = vcmp.gt.f32.partialorder %v1917_v33, 0.0  ;;  %v1940_v35 = vmul.f32 0.01, %v1917_v33  ;;  %v1946_v39 = vsel %vm1930_vm11, %v1913_v27, %v1938_v32 }
 0xbed   :  { %v1947_v37 = vsel %vm1931_vm5, %v1915_v30, %v1939_v34 }
 0xbee   :  { %v1953_v40 = vpack.c.bf16 %v1947_v37, %v1945_v36  ;;  %v1948_v41 = vsel %vm1932_vm6, %v1917_v33, %v1940_v35  ;;  %v1920_v42 = vpop.f32.mrb[36].mxu0 }
 0xbef   :  { %v1954_v43 = vpack.c.bf16 %v1948_v41, %v1946_v39  ;;  %v1921_v44 = vadd.f32 %v1920_v42, %v1845_v38  ;;  %v1922_v45 = vpop.f32.mrb[37].mxu0 }
 0xbf0   :  { %v1923_v47 = vadd.f32 %v1922_v45, %v1845_v38  ;;  %v1924_v48 = vpop.f32.mrb[38].mxu0  ;;  %1961 = vrot.lane.b32.xlu1 %v1953_v40, %s2692_s28  ;;  %v2517_v45 = vld [vmem:[#allocation8] ss:$8 sps:$4 sm:$0xff]  }
 0xbf1   :  { %v1941_v50 = vmul.f32 0.01, %v1921_v44  ;;  %v1925_v52 = vadd.f32 %v1924_v48, %v1850_v46  ;;  %v1926_v54 = vpop.f32.mrb[39].mxu0  ;;  %1963 = vrot.lane.b32.xlu0 %v1954_v43, %s2692_s28  ;;  %2045 = vmatprep.subr.bf16.mxu1 %v1954_v43  ;;  %vm1933_vm9 = vcmp.gt.f32.partialorder %v1921_v44, 0.0 }
 0xbf2   :  { %v1942_v56 = vmul.f32 0.01, %v1923_v47  ;;  %v1927_v57 = vadd.f32 %v1926_v54, %v1850_v46  ;;  %2046 = vmatpush1.bf16.msra.mxu1 %v1953_v40  ;;  %vm1934_vm12 = vcmp.gt.f32.partialorder %v1923_v47, 0.0  ;;  %v2520_v46 = vld [vmem:[#allocation8 + $0x14] ss:$8 sps:$4 sm:$0xff]  }
 0xbf3   :  { %vm1935_vm10 = vcmp.gt.f32.partialorder %v1925_v52, 0.0  ;;  %v1943_v58 = vmul.f32 0.01, %v1925_v52  ;;  %v1949_v60 = vsel %vm1933_vm9, %v1921_v44, %v1941_v50 }
 0xbf4   :  { %vm1936_vm13 = vcmp.gt.f32.partialorder %v1927_v57, 0.0  ;;  %v1944_v59 = vmul.f32 0.01, %v1927_v57  ;;  %v1950_v62 = vsel %vm1934_vm12, %v1923_v47, %v1942_v56  ;;  %v2522_v47 = vld [vmem:[#allocation8 + $0x10] ss:$8 sps:$4 sm:$0xff]  }
 0xbf5   :  { %v1951_v61 = vsel %vm1935_vm10, %v1925_v52, %v1943_v58 }
 0xbf6   :  { %v1955_v63 = vpack.c.bf16 %v1951_v61, %v1949_v60  ;;  %v1952_v0 = vsel %vm1936_vm13, %v1927_v57, %v1944_v59 }
 0xbf7   :  { %v1956_v1 = vpack.c.bf16 %v1952_v0, %v1950_v62 }
 0xbf8   :  { %1965 = vrot.lane.b32.xlu1 %v1955_v63, %s2692_s28 }
 0xbf9   :  { %1967 = vrot.lane.b32.xlu0 %v1956_v1, %s2692_s28  ;;  %2047 = vmatprep.subr.bf16.mxu1 %v1956_v1 }
 0xbfa   :  { %2048 = vmatpush1.bf16.msra.mxu1 %v1955_v63 }
 0xbfc   :  { %1975 = vrot.lane.b32.xlu1 %v1953_v40, %s2691_s1 }
 0xbfd   :  { %1977 = vrot.lane.b32.xlu0 %v1954_v43, %s2691_s1 }
 0xc00   :  { %1979 = vrot.lane.b32.xlu1 %v1955_v63, %s2691_s1 }
 0xc01   :  { %1981 = vrot.lane.b32.xlu0 %v1956_v1, %s2691_s1 }
 0xc04   :  { %1989 = vrot.lane.b32.xlu1 %v1953_v40, %s2694_s9 }
 0xc05   :  { %1991 = vrot.lane.b32.xlu0 %v1954_v43, %s2694_s9 }
 0xc08   :  { %1993 = vrot.lane.b32.xlu1 %v1955_v63, %s2694_s9 }
 0xc09   :  { %1995 = vrot.lane.b32.xlu0 %v1956_v1, %s2694_s9 }
 0xc0c   :  { %2003 = vrot.lane.b32.xlu1 %v1953_v40, %s2695_s22 }
 0xc0d   :  { %2005 = vrot.lane.b32.xlu0 %v1954_v43, %s2695_s22 }
 0xc10   :  { %2007 = vrot.lane.b32.xlu1 %v1955_v63, %s2695_s22 }
 0xc11   :  { %2009 = vrot.lane.b32.xlu0 %v1956_v1, %s2695_s22 }
 0xc14   :  { %1031 = vperm.xlu1 %2465, %v1025_v4  }
 0xc15   :  { %1036 = vperm.xlu0 %2464, %v1026_v5  }
 0xc18   :  { %1041 = vperm.xlu1 %2465, %v1027_v6  }
 0xc19   :  { %1046 = vperm.xlu0 %2464, %v1028_v7  }
 0xc1c   :  { %2138 = vperm.xlu1 %2465, %v1025_v4  }
 0xc1d   :  { %2143 = vperm.xlu0 %2464, %v1026_v5  }
 0xc20   :  { %2148 = vperm.xlu1 %2465, %v1027_v6  }
 0xc21   :  { %2153 = vperm.xlu0 %2464, %v1028_v7  }
 0xc62   :  { %v1962_v21 = vpop.permute.xlu1 %1961 }
 0xc63   :  { %v1964_v22 = vpop.permute.xlu0 %1963 }
 0xc64   :  { %v1969_v23 = vsel %vm117_vm0, %v1962_v21, %v1964_v22  ;;  %2049 = vmatprep.subr.bf16.mxu1 %v1964_v22 }
 0xc65   :  { %2050 = vmatpush1.bf16.msra.mxu1 %v1969_v23 }
 0xc6a   :  { %v1966_v24 = vpop.permute.xlu1 %1965 }
 0xc6b   :  { %v1968_v25 = vpop.permute.xlu0 %1967 }
 0xc6c   :  { %v1970_v26 = vsel %vm117_vm0, %v1966_v24, %v1968_v25  ;;  %2051 = vmatprep.subr.bf16.mxu1 %v1968_v25  ;;  %vm1210_vm0 = vcmask 965632  }
 0xc6d   :  { %2052 = vmatpush1.bf16.msra.mxu1 %v1970_v26 }
 0xc6e   :  { %v1976_v27 = vpop.permute.xlu1 %1975 }
 0xc6f   :  { %v1978_v28 = vpop.permute.xlu0 %1977 }
 0xc70   :  { %v1983_v29 = vsel %vm125_vm1, %v1976_v27, %v1978_v28  ;;  %2053 = vmatprep.subr.bf16.mxu1 %v1978_v28 }
 0xc71   :  { %2054 = vmatpush1.bf16.msra.mxu1 %v1983_v29 }
 0xc72   :  { %v1980_v30 = vpop.permute.xlu1 %1979 }
 0xc73   :  { %v1982_v31 = vpop.permute.xlu0 %1981 }
 0xc74   :  { %v1984_v32 = vsel %vm125_vm1, %v1980_v30, %v1982_v31  ;;  %2055 = vmatprep.subr.bf16.mxu1 %v1982_v31 }
 0xc75   :  { %2056 = vmatpush1.bf16.msra.mxu1 %v1984_v32 }
 0xc76   :  { %v1990_v33 = vpop.permute.xlu1 %1989 }
 0xc77   :  { %v1992_v34 = vpop.permute.xlu0 %1991 }
 0xc78   :  { %v1997_v35 = vsel %vm133_vm2, %v1990_v33, %v1992_v34  ;;  %2057 = vmatprep.subr.bf16.mxu1 %v1992_v34 }
 0xc79   :  { %2058 = vmatpush1.bf16.msra.mxu1 %v1997_v35 }
 0xc7a   :  { %v1994_v36 = vpop.permute.xlu1 %1993 }
 0xc7b   :  { %v1996_v37 = vpop.permute.xlu0 %1995 }
 0xc7c   :  { %v1998_v38 = vsel %vm133_vm2, %v1994_v36, %v1996_v37  ;;  %2059 = vmatprep.subr.bf16.mxu1 %v1996_v37 }
 0xc7d   :  { %2060 = vmatpush1.bf16.msra.mxu1 %v1998_v38 }
 0xc7e   :  { %v2004_v39 = vpop.permute.xlu1 %2003 }
 0xc7f   :  { %v2006_v40 = vpop.permute.xlu0 %2005 }
 0xc80   :  { %v2011_v41 = vsel %vm141_vm3, %v2004_v39, %v2006_v40  ;;  %2061 = vmatprep.subr.bf16.mxu1 %v2006_v40 }
 0xc81   :  { %2062 = vmatpush1.bf16.msra.mxu1 %v2011_v41 }
 0xc82   :  { %v2008_v42 = vpop.permute.xlu1 %2007 }
 0xc83   :  { %v2010_v43 = vpop.permute.xlu0 %2009 }
 0xc84   :  { %v2012_v44 = vsel %vm141_vm3, %v2008_v42, %v2010_v43  ;;  %2063 = vmatprep.subr.bf16.mxu1 %v2010_v43 }
 0xc85   :  { %2064 = vmatpush1.bf16.msra.mxu1 %v2012_v44 }
 0xc88   :  { %2078 = vmatmul.mubr.bf16.vlgmr.msra.gmra.mrb[40].mxu1 %v2517_v45 }
 0xc89   :  { %2429 = vmatprep.mubr.msk.bf16.mxu1 %vm762_vm7, %v2520_v46 }
 0xc90   :  { %2088 = vmatmul.mubr.bf16.gmra.mrb[44].mxu1 %v2522_v47 }
 0xc93   :  { %v1032_v48 = vpop.permute.xlu1 %1031 }
 0xc94   :  { %v1184_v50 = vadd.f32 %v3203_v49, %v1032_v48  ;;  %v1037_v52 = vpop.permute.xlu0 %1036 }
 0xc95   :  { %v1187_v54 = vadd.f32 %v3205_v51, %v1037_v52 }
 0xc96   :  { %vm1198_vm1 = vcmp.gt.f32.partialorder %v1184_v50, 0.0  ;;  %v1202_v56 = vmul.f32 0.01, %v1184_v50 }
 0xc97   :  { %vm1199_vm2 = vcmp.gt.f32.partialorder %v1187_v54, 0.0  ;;  %v1203_v57 = vmul.f32 0.01, %v1187_v54  ;;  %v1042_v58 = vpop.permute.xlu1 %1041 }
 0xc98   :  { %v1206_v59 = vsel %vm1198_vm1, %v1184_v50, %v1202_v56  ;;  %v1192_v60 = vadd.f32 %v3207_v53, %v1042_v58  ;;  %v1047_v61 = vpop.permute.xlu0 %1046  ;;  %v2536_v53 = vld [vmem:[%s3462_s11 + $0x68] sm:$0xff]  }
 0xc99   :  { %1211 = vst.msk [vmem:[#allocation11] sm:$0xff] %vm1210_vm0, %v1206_v59  ;;  %v1207_v62 = vsel %vm1199_vm2, %v1187_v54, %v1203_v57  ;;  %v1195_v63 = vadd.f32 %v3209_v55, %v1047_v61  ;;  %2281 = vmatpush1.bf16.msra.mxu0 %v2536_v53  ;;  %v2537_v55 = vld [vmem:[%s3462_s11 + $0x70] sm:$0x3f]   ;;  %s2696_s11 = smov [#allocation10]  }
 0xc9a   :  { %1212 = vst.msk [vmem:[#allocation11 + $0x8] sm:$0xff] %vm1210_vm0, %v1207_v62  ;;  %vm1200_vm3 = vcmp.gt.f32.partialorder %v1192_v60, 0.0  ;;  %v1204_v49 = vmul.f32 0.01, %v1192_v60  ;;  %2282 = vmatprep.subr.bf16.mxu0 %v2693_v2  ;;  %v2252_v3 = vsel %vm1145_vm8, %v2537_v55, 0  ;;  %s2325_s0 = sshll.u32 %s2696_s11, 4  ;;  %s2326_s0 = int_to_ptr.vmem [resolvable:$true] %s2325_s0 }
 0xc9b   :  { %vm1201_vm7 = vcmp.gt.f32.partialorder %v1195_v63, 0.0  ;;  %v1205_v51 = vmul.f32 0.01, %v1195_v63  ;;  %s2629_s10 = scalar_lea.vmem %s2326_s0, 1536  ;;  %p2634_p5 = scmp.lt.s32.totalorder %s2326_s0, %s2326_s0 }
 0xc9c   :  { %v1208_v0 = vsel %vm1200_vm3, %v1192_v60, %v1204_v49  ;;  %p2630_p4 = scmp.ne.s32.totalorder %s2326_s0, %s2629_s10  ;;  %p2635_p6 = scmp.lt.s32.totalorder %s2629_s10, %s2629_s10 }
 0xc9d   :  { %1213 = vst.msk [vmem:[#allocation11 + $0x10] sm:$0xff] %vm1210_vm0, %v1208_v0  ;;  %v1209_v1 = vsel %vm1201_vm7, %v1195_v63, %v1205_v51  ;;  %2283 = vmatpush1.bf16.msra.mxu0 %v2252_v3 }
 0xc9e   :  { %1214 = vst.msk [vmem:[#allocation11 + $0x18] sm:$0xff] %vm1210_vm0, %v1209_v1  ;;  %p2636_p7 = por %p2635_p6, %p2634_p5 }
 0xca0   :  { %p2637_p8 = pnand %p2636_p7, %p2630_p4 }
 0xd5b   :  { %v2079_v4 = vpop.f32.mrb[40].mxu1 }
 0xd5c   :  { %v2081_v5 = vpop.f32.mrb[41].mxu1 }
 0xd5d   :  { %v2083_v6 = vpop.f32.mrb[42].mxu1 }
 0xd5e   :  { %v2098_v7 = vpack.c.bf16 %v2083_v6, %v2079_v4  ;;  %v2085_v8 = vpop.f32.mrb[43].mxu1 }
 0xd5f   :  { %v2099_v9 = vpack.c.bf16 %v2085_v8, %v2081_v5 }
 0xd61   :  { %2445 = vmatprep.mubr.msk.bf16.mxu0 %vm1138_vm4, %v2099_v9 }
 0xd62   :  { %2287 = vmatmul.mubr.bf16.vlgmr.msra.gmra.mrb[40].mxu0 %v2098_v7 }
 0xd63   :  { %v2089_v10 = vpop.f32.mrb[44].mxu1 }
 0xd64   :  { %v2091_v11 = vpop.f32.mrb[45].mxu1 }
 0xd65   :  { %v2093_v12 = vpop.f32.mrb[46].mxu1 }
 0xd66   :  { %v2100_v2 = vpack.c.bf16 %v2093_v12, %v2089_v10  ;;  %v2095_v13 = vpop.f32.mrb[47].mxu1 }
 0xd67   :  { %v2101_v14 = vpack.c.bf16 %v2095_v13, %v2091_v11 }
 0xd69   :  { %2446 = vmatprep.mubr.msk.bf16.mxu0 %vm1138_vm4, %v2101_v14 }
 0xd6a   :  { %2295 = vmatmul.mubr.bf16.gmra.mrb[44].mxu0 %v2100_v2 }
 0xd6b   :  { %2640 = shalt.err (!%p2637_p8)
}
 0xd6c   :  { %s2641_s29 = scalar_lea.hbm %s3463_s12, 1536 }
 0xd6d   :  { %p2642_p9 = scmp.ne.s32.totalorder %s3463_s12, %s2641_s29  ;;  %p2645_p10 = scmp.lt.u32.totalorder %s2641_s29, %s3463_s12 }
 0xd6f   :  { %p2647_p11 = pnand %p2645_p10, %p2642_p9 }
 0xd71   :  { %2650 = shalt.err (!%p2647_p11)
}
 0xd72   :  { %s2697_s16 = smov 256   ;;  %s2698_s4 = smov 16   ;;  %v2139_v15 = vpop.permute.xlu1 %2138  ;;  %v2144_v19 = vpop.permute.xlu0 %2143 }
 0xd73   :  { %2331 = dma.vmem_to_hbm [thread:$0]  %s2326_s0, 1536, %s3463_s12, [#allocation4], %s2697_s16, %s2697_s16, %s2698_s4  }
 0xd74   :  { %s2699_s12 = smov [#allocation11]  }
 0xd75   :  { %s2337_s17 = sshll.u32 %s2699_s12, 4  ;;  %s2338_s17 = int_to_ptr.vmem [resolvable:$true] %s2337_s17 }
 0xd76   :  { %v2149_v27 = vpop.permute.xlu1 %2148  ;;  %v2154_v31 = vpop.permute.xlu0 %2153  ;;  %s2651_s7 = scalar_lea.vmem %s2338_s17, 1024  ;;  %p2656_p13 = scmp.lt.s32.totalorder %s2338_s17, %s2338_s17 }
 0xd77   :  { %p2652_p12 = scmp.ne.s32.totalorder %s2338_s17, %s2651_s7  ;;  %p2657_p0 = scmp.lt.s32.totalorder %s2651_s7, %s2651_s7 }
 0xd79   :  { %p2658_p1 = por %p2657_p0, %p2656_p13 }
 0xd7b   :  { %p2659_p2 = pnand %p2658_p1, %p2652_p12 }
 0xe35   :  { %v2288_v16 = vpop.f32.mrb[40].mxu0 }
 0xe36   :  { %v2289_v17 = vadd.f32 %v2288_v16, %v2139_v15  ;;  %v2290_v18 = vpop.f32.mrb[41].mxu0 }
 0xe37   :  { %v2291_v20 = vpop.f32.mrb[42].mxu0 }
 0xe38   :  { %vm2303_vm8 = vcmp.gt.f32.partialorder %v2289_v17, 0.0  ;;  %v2307_v21 = vmul.f32 0.01, %v2289_v17  ;;  %v2292_v22 = vadd.f32 %v2291_v20, %v2144_v19  ;;  %v2293_v23 = vpop.f32.mrb[43].mxu0 }
 0xe3a   :  { %v2311_v24 = vsel %vm2303_vm8, %v2289_v17, %v2307_v21  ;;  %vm2304_vm4 = vcmp.gt.f32.partialorder %v2292_v22, 0.0  ;;  %v2308_v25 = vmul.f32 0.01, %v2292_v22 }
 0xe3b   :  { %2316 = vst.msk [vmem:[#allocation11 + $0x20] sm:$0xff] %vm1210_vm0, %v2311_v24 }
 0xe3c   :  { %v2312_v26 = vsel %vm2304_vm4, %v2292_v22, %v2308_v25 }
 0xe3d   :  { %2317 = vst.msk [vmem:[#allocation11 + $0x28] sm:$0xff] %vm1210_vm0, %v2312_v26  ;;  %v2296_v28 = vpop.f32.mrb[44].mxu0 }
 0xe3e   :  { %v2297_v29 = vadd.f32 %v2296_v28, %v2149_v27  ;;  %v2298_v30 = vpop.f32.mrb[45].mxu0 }
 0xe3f   :  { %v2299_v32 = vpop.f32.mrb[46].mxu0 }
 0xe40   :  { %vm2305_vm14 = vcmp.gt.f32.partialorder %v2297_v29, 0.0  ;;  %v2309_v33 = vmul.f32 0.01, %v2297_v29  ;;  %v2300_v34 = vadd.f32 %v2299_v32, %v2154_v31  ;;  %v2301_v35 = vpop.f32.mrb[47].mxu0 }
 0xe42   :  { %v2313_v36 = vsel %vm2305_vm14, %v2297_v29, %v2309_v33  ;;  %vm2306_vm15 = vcmp.gt.f32.partialorder %v2300_v34, 0.0  ;;  %v2310_v37 = vmul.f32 0.01, %v2300_v34 }
 0xe43   :  { %2318 = vst.msk [vmem:[#allocation11 + $0x30] sm:$0xff] %vm1210_vm0, %v2313_v36 }
 0xe44   :  { %v2314_v38 = vsel %vm2306_vm15, %v2300_v34, %v2310_v37 }
 0xe45   :  { %2319 = vst.msk [vmem:[#allocation11 + $0x38] sm:$0xff] %vm1210_vm0, %v2314_v38 }
 0xe46   :  { %2662 = shalt.err (!%p2659_p2)
}
 0xe47   :  { %s2663_s19 = scalar_lea.hbm %s3464_s13, 1024 }
 0xe48   :  { %p2664_p3 = scmp.ne.s32.totalorder %s3464_s13, %s2663_s19  ;;  %p2667_p4 = scmp.lt.u32.totalorder %s2663_s19, %s3464_s13 }
 0xe4a   :  { %p2669_p5 = pnand %p2667_p4, %p2664_p3 }
 0xe4c   :  { %2672 = shalt.err (!%p2669_p5)
}
 0xe4d   :  { %2343 = dma.vmem_to_hbm [thread:$0]  %s2338_s17, 1024, %s3464_s13, [#allocation12], %s2689_s5, %s2689_s5, %s2690_s20  }
 0xe4e   :  { %2679 = dma.done.wait [#allocation4], 1536  }
 0xe4f   :  { %2680 = vsyncadd [#allocation4], 4294965760 }
 0xe50   :  { %2681 = dma.done.wait [#allocation12], 1024  }
 0xe51   :  { %2682 = vsyncadd [#allocation12], 4294966272 }
 0xe52   :  { %2350 = vsyncpa [#allocation3], 1 }
 0xe53   :  { %2351 = vsyncpa [#allocation6], 1 }
 0xe54   :  { %2352 = vsyncpa [#allocation9], 1 }
 0xe55   :  { %2353 = vsyncpa [#allocation4], 1 }
 0xe56   :  { %2354 = vsyncpa [#allocation12], 1 }

</bundles_post_ra>
